<compile_context>
chip_gen: v5e
topology: v5e:2x2
jax: 0.10.0
libtpu: 0.0.40
codegen_flags: <defaults>
</compile_context>

<pallas_src>
import jax
import jax.numpy as jnp
from jax.experimental import pallas as pl
from jax.experimental.pallas import tpu as pltpu

# ConvTranspose2d hyper-parameters from the module
C_IN, C_OUT = 1, 32
KH, KW = 11, 1
SH, SW = 6, 2
PH, PW = 0, 17
OPH, OPW = 5, 1

LANES = 128


def _deconv_matmul_kernel(g_ref, x_ref, b_ref, o_ref):
    # g_ref: (m_blk, H_in) bf16   x_ref: (H_in, L_pad) bf16   b_ref: (m_blk, 1) f32
    # Single-pass bf16 MXU matmul with f32 accumulation; bias add on the VPU.
    o_ref[...] = (
        jnp.dot(g_ref[...], x_ref[...], preferred_element_type=jnp.float32)
        + b_ref[...]
    )


def precompute_deconv_operands(weight, bias, h_in):
    """Fold (co, kh) weights into a (C_out*H_out, H_in) operator + bias column.

    Depends only on module parameters (and H_in), so it is computed once and
    reused across forward calls.  G is returned in bf16 (MXU operand dtype).
    """
    h_out = (h_in - 1) * SH - 2 * PH + KH + OPH
    w = weight[0, :, :, 0]                                  # (C_out, KH)
    oh = jnp.arange(h_out)[:, None]
    ih = jnp.arange(h_in)[None, :]
    kh = oh - SH * ih                                       # (H_out, H_in)
    valid = (kh >= 0) & (kh < KH)
    kh_c = jnp.clip(kh, 0, KH - 1)
    g = jnp.where(valid[None, :, :], w[:, kh_c], 0.0)       # (C_out, H_out, H_in)
    g_flat = g.reshape(C_OUT * h_out, h_in).astype(jnp.bfloat16)
    bias_col = jnp.repeat(bias, h_out).reshape(C_OUT * h_out, 1).astype(jnp.float32)
    return g_flat, bias_col


@jax.jit
def deconv_forward(x, g_flat, bias_col):
    """Forward of DeconvExample.  x: (N, 1, H_in, W_in) float32, NCHW."""
    n, c_in, h_in, w_in = x.shape
    assert c_in == C_IN
    h_out = (h_in - 1) * SH - 2 * PH + KH + OPH
    w_out = (w_in - 1) * SW - 2 * PW + KW + OPW
    assert w_out > 0, "W_in too small for padding=(0,17)"
    m = C_OUT * h_out
    assert g_flat.shape == (m, h_in)

    # Width mapping of the transposed conv (KW == 1): output column ow takes
    # input column iw iff ow == SW*iw - PW; all other columns are bias only.
    ow0 = (-PW) % SW
    n_valid = -(-(w_out - ow0) // SW)                       # cdiv
    iw0 = (ow0 + PW) // SW
    assert 0 <= iw0 and iw0 + n_valid <= w_in

    # Scatter the taps into W_out columns and fold the batch into lanes:
    # xg_l[ih, nb*W_out + ow].  Lane-pad to a multiple of 128 so the kernel's
    # output stores are fully lane-dense.  Cast to bf16 (MXU operand dtype).
    xs = x[:, 0, :, iw0:iw0 + n_valid]                      # (N, H_in, n_valid)
    xg = jnp.zeros((n, h_in, w_out), x.dtype).at[:, :, ow0::SW].set(xs)
    lanes = n * w_out
    lanes_pad = max(LANES, pl.cdiv(lanes, LANES) * LANES)
    xg_l = jnp.moveaxis(xg, 0, 1).reshape(h_in, lanes)
    xg_l = jnp.pad(xg_l, ((0, 0), (0, lanes_pad - lanes))).astype(jnp.bfloat16)

    # 2-way split of the output rows keeps both v7x TensorCores busy
    # (harmless on single-TC v5e/v6e); each block stays (8,128)/(16,128)-aligned.
    n_blk = 2 if m % 32 == 0 else 1
    m_blk = m // n_blk

    out_flat = pl.pallas_call(
        _deconv_matmul_kernel,
        out_shape=jax.ShapeDtypeStruct((m, lanes_pad), jnp.float32),
        grid_spec=pltpu.PrefetchScalarGridSpec(
            num_scalar_prefetch=0,
            grid=(n_blk,),
            in_specs=[
                pl.BlockSpec((m_blk, h_in), lambda i: (i, 0)),       # G rows (bf16)
                pl.BlockSpec((h_in, lanes_pad), lambda i: (0, 0)),   # xg (shared, bf16)
                pl.BlockSpec((m_blk, 1), lambda i: (i, 0)),          # bias rows (f32)
            ],
            out_specs=pl.BlockSpec((m_blk, lanes_pad), lambda i: (i, 0)),
        ),
        compiler_params=pltpu.CompilerParams(dimension_semantics=("parallel",)),
    )(g_flat, xg_l, bias_col)

    # (C_out*H_out, N*W_out) -> (N, C_out, H_out, W_out).  The slice +
    # transpose fuse into a single small XLA copy under jit (~1.7 MB).
    out = out_flat[:, :lanes].reshape(C_OUT, h_out, n, w_out)
    return out.transpose(2, 0, 1, 3)


def _reference(x, weight, bias):
    """Independent pure-JAX f32 reference: zero-insertion + crop + flipped-kernel conv."""
    N, _, H_in, W_in = x.shape
    H_out = (H_in - 1) * SH - 2 * PH + KH + OPH
    W_out = (W_in - 1) * SW - 2 * PW + KW + OPW
    H_dil = (H_in - 1) * SH + 1
    W_dil = (W_in - 1) * SW + 1
    x_dil = jnp.zeros((N, H_dil, W_dil), x.dtype)
    x_dil = x_dil.at[:, ::SH, ::SW].set(x[:, 0])
    crop_lo = PW - (KW - 1)            # = 17
    crop_hi = PW - (KW - 1) - OPW      # = 16
    x_dil = x_dil[:, :, crop_lo:W_dil - crop_hi]
    x_pad = jnp.pad(x_dil, ((0, 0), (KH - 1 - PH, KH - 1 - PH + OPH), (0, 0)))
    wf = weight[0, :, ::-1, 0]                              # flipped (C_out, KH)
    out = jnp.zeros((N, C_OUT, H_out, W_out), x.dtype)
    for j in range(KH):
        out = out + wf[None, :, j, None, None] * x_pad[:, None, j:j + H_out, :]
    return out + bias[None, :, None, None]


if __name__ == "__main__":
    key = jax.random.PRNGKey(0)
    kx, kw, kb = jax.random.split(key, 3)

    N, H_in, W_in = 2, 16, 48                               # -> out (2, 32, 106, 62)
    x = jax.random.normal(kx, (N, C_IN, H_in, W_in), dtype=jnp.float32)
    # ConvTranspose2d weight layout: (in_channels, out_channels, kH, kW)
    weight = 0.1 * jax.random.normal(kw, (C_IN, C_OUT, KH, KW), dtype=jnp.float32)
    bias = 0.1 * jax.random.normal(kb, (C_OUT,), dtype=jnp.float32)

    # Parameter-dependent operands built once (hoisted out of the call path).
    g_flat, bias_col = precompute_deconv_operands(weight, bias, H_in)

    out = deconv_forward(x, g_flat, bias_col)
    out = jax.block_until_ready(out)

    ref = _reference(x, weight, bias)
    H_out = (H_in - 1) * SH - 2 * PH + KH + OPH
    W_out = (W_in - 1) * SW - 2 * PW + KW + OPW
    assert out.shape == (N, C_OUT, H_out, W_out)
    # bf16-operand / f32-accumulate MXU matmul; with <=2 taps per output the
    # deviation from the pure-f32 reference is ~1e-3 typical, while any
    # structural bug is >=0.1.
    assert jnp.allclose(out, ref, rtol=2e-2, atol=3e-2), (
        "mismatch vs reference: max abs err "
        f"{jnp.max(jnp.abs(out - ref)):.3e}")
    print("KERNEL_OK")
</pallas_src>

<mosaic_0001>
module attributes {stable_mosaic.version = 11 : i64} {
  func.func @_deconv_matmul_kernel(%arg0: i32, %arg1: memref<1696x16xbf16, #tpu.memory_space<vmem>>, %arg2: memref<16x128xbf16, #tpu.memory_space<vmem>>, %arg3: memref<1696x1xf32, #tpu.memory_space<vmem>>, %arg4: memref<1696x128xf32, #tpu.memory_space<vmem>>) attributes {dimension_semantics = [#tpu.dimension_semantics<parallel>], iteration_bounds = array<i64: 2>, scalar_prefetch = 0 : i64, scratch_operands = 0 : i64, tpu.core_type = #tpu.core_type<tc>, window_params = [{transform_indices = @transform_0, window_bounds = array<i64: 1696, 16>}, {pipeline_mode = #tpu.pipeline_mode<synchronous>, transform_indices = @transform_1, window_bounds = array<i64: 16, 128>}, {transform_indices = @transform_2, window_bounds = array<i64: 1696, 1>}, {transform_indices = @transform_3, window_bounds = array<i64: 1696, 128>}]} {
    %c0 = arith.constant 0 : index
    %c0_0 = arith.constant 0 : index
    %0 = vector.load %arg1[%c0, %c0_0] : memref<1696x16xbf16, #tpu.memory_space<vmem>>, vector<1696x16xbf16>
    %c0_1 = arith.constant 0 : index
    %c0_2 = arith.constant 0 : index
    %1 = vector.load %arg2[%c0_1, %c0_2] : memref<16x128xbf16, #tpu.memory_space<vmem>>, vector<16x128xbf16>
    %cst = arith.constant dense<0.000000e+00> : vector<1696x128xf32>
    %2 = tpu.matmul %0, %1, %cst {dimension_numbers = #tpu.dot_dimension_numbers<[1], [0], [0], [1], [0, 0, 1, 1], [], []>} : vector<1696x16xbf16>, vector<16x128xbf16>, vector<1696x128xf32> -> vector<1696x128xf32>
    %c0_3 = arith.constant 0 : index
    %c0_4 = arith.constant 0 : index
    %3 = vector.load %arg3[%c0_3, %c0_4] : memref<1696x1xf32, #tpu.memory_space<vmem>>, vector<1696x1xf32>
    %4 = vector.broadcast %3 : vector<1696x1xf32> to vector<1696x128xf32>
    %5 = arith.addf %2, %4 : vector<1696x128xf32>
    %c0_5 = arith.constant 0 : index
    %c0_6 = arith.constant 0 : index
    %6 = vector.load %arg4[%c0_5, %c0_6] : memref<1696x128xf32, #tpu.memory_space<vmem>>, vector<1696x128xf32>
    tpu.vector_store %arg4[%c0_5, %c0_6], %5 {strides = array<i32>} : memref<1696x128xf32, #tpu.memory_space<vmem>>, vector<1696x128xf32>,
    return
  }
  func.func @transform_0(%arg0: i32) -> (i32, i32) {
    %c0_i32 = arith.constant 0 : i32
    %c0_i32_0 = arith.constant 0 : i32
    return %arg0, %c0_i32 : i32, i32
  }
  func.func @transform_1(%arg0: i32) -> (i32, i32) {
    %c0_i32 = arith.constant 0 : i32
    %c0_i32_0 = arith.constant 0 : i32
    %c0_i32_1 = arith.constant 0 : i32
    return %c0_i32, %c0_i32_0 : i32, i32
  }
  func.func @transform_2(%arg0: i32) -> (i32, i32) {
    %c0_i32 = arith.constant 0 : i32
    %c0_i32_0 = arith.constant 0 : i32
    return %arg0, %c0_i32 : i32, i32
  }
  func.func @transform_3(%arg0: i32) -> (i32, i32) {
    %c0_i32 = arith.constant 0 : i32
    %c0_i32_0 = arith.constant 0 : i32
    return %arg0, %c0_i32 : i32, i32
  }
}

</mosaic_0001>

<bundles_post_ra>
// kernel: deconv_forward.1
= control target key start
LH: loop header
LB: loop body
LE: loop exit
PB: predicated region body
PF: predicated region fallthrough
CT: control target
= control target key end

     0   :  { %s4052_s12 = smov 0   ;;  %s5283_s0 = inlined_call_operand.vmem [shape: bf16[3392,16], index: 0, kind: input, shape index: {}]   ;;  %s5284_s1 = inlined_call_operand.vmem [shape: bf16[16,128], index: 1, kind: input, shape index: {}]   ;;  %s5285_s2 = inlined_call_operand.vmem [shape: f32[3392,1], index: 2, kind: input, shape index: {}]   ;;  %s5286_s3 = inlined_call_operand.vmem [shape: f32[3392,128], index: 3, kind: output, shape index: {}]  }
   0x1 LB: > { %s3357_s13 = sadd.s32 4294967295, %s4029_s12   ;;  %p3361_p0 = scmp.ge.s32.totalorder %s4029_s12, 1  ;;  %s4029_s12 = sphi %s4052_s12, %s13_s12  }
   0x2   : > { %p149_p1 = scmp.lt.s32.totalorder %s4029_s12, 3 }
   0x4   : > { %p150_p2 = pnand %p3361_p0, %p149_p1 }
   0x6   : > { %153 = sbr.rel (%p150_p2) target bundleno = 698 (0x2ba), region = 32 }
   0xb   : > { %v4007_v0 = vld [vmem:[%s5284_s1] sm:$0xff]  ;;  %s178_s16 = smul.u32 212, %s3357_s13  ;;  %v4031_v1 = vmov 0   ;;  %vm2219_vm0 = vcmask 130048  }
   0xc   : > { %4022 = vset.pattern.permute.xlu2 %v4031_v1  ;;  %4021 = vset.pattern.permute.xlu1 %v4031_v1 }
   0xd   : > { %4020 = vset.pattern.permute.xlu0 %v4031_v1  ;;  %2545 = vmatpush.bf16.msra.mxu0 %v4007_v0  ;;  %p179_p3 = scmp.lt.s32.totalorder %s178_s16, 423 }
   0xe   : > { %4008 = vmatpush.bf16.msra.mxu1 %v4007_v0  ;;  %4009 = vmatpush.bf16.msra.mxu2 %v4007_v0 }
   0xf   : > { %s5368_s16 = smov (!%p179_p3, %s178_s16), 423  ;;  %4010 = vmatpush.bf16.msra.mxu3 %v4007_v0 }
  0x10   : > { %s3363_s17 = sshll.u32 %s5368_s16, 3  ;;  %s3362_s18 = sshll.u32 %s5368_s16, 2 }
  0x11   : > { %s4072_s21 = scalar_lea.vmem %s5285_s2, %s3363_s17  ;;  %s4077_s24 = scalar_lea.vmem %s5283_s0, %s3362_s18 }
  0x12   : > { %v415_v2 = vld [vmem:[%s4072_s21 + $0x20] sm:$0xff]  ;;  %v413_v3 = vld [vmem:[%s4072_s21 + $0x10] sm:$0xff]  ;;  %v3928_v6 = vld [vmem:[%s4077_s24 + $0xd8] sm:$0xff]  ;;  %s4201_s27 = scalar_lea.vmem %s5286_s3, %s3363_s17 }
  0x13   : > { %v411_v4 = vld [vmem:[%s4072_s21] sm:$0xff]  ;;  %645 = vperm.xlu2 %4022, %v415_v2   ;;  %635 = vperm.xlu1 %4021, %v413_v3   ;;  %v3955_v7 = vld [vmem:[%s4077_s24 + $0x1b0] sm:$0xff]  ;;  %v416_v8 = vld [vmem:[%s4072_s21 + $0x28] sm:$0xff] }
  0x14   : > { %v3901_v5 = vld [vmem:[%s4077_s24] sm:$0xff]  ;;  %625 = vperm.xlu0 %4020, %v411_v4   ;;  %3820 = vmatmul.msk.bf16.vlgmr.msra.gmra.mxu1 %vm2219_vm0, %v3928_v6  ;;  %v414_v9 = vld [vmem:[%s4072_s21 + $0x18] sm:$0xff]  ;;  %v412_v10 = vld [vmem:[%s4072_s21 + $0x8] sm:$0xff] }
  0x15   : > { %3793 = vmatmul.msk.bf16.vlgmr.msra.gmra.mxu0 %vm2219_vm0, %v3901_v5  ;;  %3847 = vmatmul.msk.bf16.vlgmr.msra.gmra.mxu2 %vm2219_vm0, %v3955_v7  ;;  %v419_v11 = vld [vmem:[%s4072_s21 + $0x40] sm:$0xff]  ;;  %v418_v12 = vld [vmem:[%s4072_s21 + $0x38] sm:$0xff]  ;;  %v417_v13 = vld [vmem:[%s4072_s21 + $0x30] sm:$0xff] }
  0x16   : > { %v3902_v14 = vld [vmem:[%s4077_s24 + $0x8] sm:$0xff]  ;;  %v3929_v15 = vld [vmem:[%s4077_s24 + $0xe0] sm:$0xff]  ;;  %v3956_v16 = vld [vmem:[%s4077_s24 + $0x1b8] sm:$0xff] }
  0x17   : > { %v422_v17 = vld [vmem:[%s4072_s21 + $0x58] sm:$0xff]  ;;  %v421_v18 = vld [vmem:[%s4072_s21 + $0x50] sm:$0xff]  ;;  %v420_v19 = vld [vmem:[%s4072_s21 + $0x48] sm:$0xff] }
  0x18   : > { %v425_v20 = vld [vmem:[%s4072_s21 + $0x70] sm:$0xff]  ;;  %v424_v21 = vld [vmem:[%s4072_s21 + $0x68] sm:$0xff]  ;;  %v423_v22 = vld [vmem:[%s4072_s21 + $0x60] sm:$0xff] }
  0x19   : > { %v3903_v23 = vld [vmem:[%s4077_s24 + $0x10] sm:$0xff]  ;;  %v3930_v24 = vld [vmem:[%s4077_s24 + $0xe8] sm:$0xff]  ;;  %v3957_v25 = vld [vmem:[%s4077_s24 + $0x1c0] sm:$0xff] }
  0x1a   : > { %v428_v26 = vld [vmem:[%s4072_s21 + $0x88] sm:$0xff]  ;;  %v427_v27 = vld [vmem:[%s4072_s21 + $0x80] sm:$0xff]  ;;  %v426_v28 = vld [vmem:[%s4072_s21 + $0x78] sm:$0xff] }
  0x1b   : > { %650 = vperm.xlu2 %4022, %v416_v8   ;;  %640 = vperm.xlu1 %4021, %v414_v9   ;;  %v431_v29 = vld [vmem:[%s4072_s21 + $0xa0] sm:$0xff]  ;;  %v430_v30 = vld [vmem:[%s4072_s21 + $0x98] sm:$0xff]  ;;  %v429_v31 = vld [vmem:[%s4072_s21 + $0x90] sm:$0xff] }
  0x1c   : > { %630 = vperm.xlu0 %4020, %v412_v10   ;;  %v3904_v32 = vld [vmem:[%s4077_s24 + $0x18] sm:$0xff]  ;;  %v3931_v33 = vld [vmem:[%s4077_s24 + $0xf0] sm:$0xff]  ;;  %v3958_v34 = vld [vmem:[%s4077_s24 + $0x1c8] sm:$0xff] }
  0x1d   : > { %v434_v35 = vld [vmem:[%s4072_s21 + $0xb8] sm:$0xff]  ;;  %v433_v36 = vld [vmem:[%s4072_s21 + $0xb0] sm:$0xff]  ;;  %v432_v37 = vld [vmem:[%s4072_s21 + $0xa8] sm:$0xff] }
  0x1e   : > { %v437_v38 = vld [vmem:[%s4072_s21 + $0xd0] sm:$0xff]  ;;  %v436_v39 = vld [vmem:[%s4072_s21 + $0xc8] sm:$0xff]  ;;  %v435_v40 = vld [vmem:[%s4072_s21 + $0xc0] sm:$0xff] }
  0x1f   : > { %v3905_v41 = vld [vmem:[%s4077_s24 + $0x20] sm:$0xff]  ;;  %v3932_v42 = vld [vmem:[%s4077_s24 + $0xf8] sm:$0xff]  ;;  %v3959_v43 = vld [vmem:[%s4077_s24 + $0x1d0] sm:$0xff] }
  0x20   : > { %v440_v44 = vld [vmem:[%s4072_s21 + $0xe8] sm:$0xff]  ;;  %v439_v45 = vld [vmem:[%s4072_s21 + $0xe0] sm:$0xff]  ;;  %v438_v46 = vld [vmem:[%s4072_s21 + $0xd8] sm:$0xff] }
  0x21   : > { %v443_v47 = vld [vmem:[%s4072_s21 + $0x100] sm:$0xff]  ;;  %v442_v48 = vld [vmem:[%s4072_s21 + $0xf8] sm:$0xff]  ;;  %v441_v49 = vld [vmem:[%s4072_s21 + $0xf0] sm:$0xff] }
  0x22   : > { %v3906_v50 = vld [vmem:[%s4077_s24 + $0x28] sm:$0xff]  ;;  %v3933_v51 = vld [vmem:[%s4077_s24 + $0x100] sm:$0xff]  ;;  %v3960_v52 = vld [vmem:[%s4077_s24 + $0x1d8] sm:$0xff] }
  0x23   : > { %665 = vperm.xlu2 %4022, %v419_v11   ;;  %660 = vperm.xlu1 %4021, %v418_v12   ;;  %v446_v53 = vld [vmem:[%s4072_s21 + $0x118] sm:$0xff]  ;;  %v445_v54 = vld [vmem:[%s4072_s21 + $0x110] sm:$0xff]  ;;  %v444_v55 = vld [vmem:[%s4072_s21 + $0x108] sm:$0xff] }
  0x24   : > { %655 = vperm.xlu0 %4020, %v417_v13   ;;  %3821 = vmatmul.msk.bf16.gmra.mxu1 %vm2219_vm0, %v3929_v15  ;;  %v449_v57 = vld [vmem:[%s4072_s21 + $0x130] sm:$0xff]  ;;  %v448_v58 = vld [vmem:[%s4072_s21 + $0x128] sm:$0xff]  ;;  %v447_v59 = vld [vmem:[%s4072_s21 + $0x120] sm:$0xff] }
  0x25   : > { %3794 = vmatmul.msk.bf16.gmra.mxu0 %vm2219_vm0, %v3902_v14  ;;  %3848 = vmatmul.msk.bf16.gmra.mxu2 %vm2219_vm0, %v3956_v16  ;;  %v3907_v60 = vld [vmem:[%s4077_s24 + $0x30] sm:$0xff]  ;;  %v3934_v61 = vld [vmem:[%s4077_s24 + $0x108] sm:$0xff]  ;;  %v3961_v62 = vld [vmem:[%s4077_s24 + $0x1e0] sm:$0xff] }
  0x26   : > { %v452_v0 = vld [vmem:[%s4072_s21 + $0x148] sm:$0xff]  ;;  %v451_v1 = vld [vmem:[%s4072_s21 + $0x140] sm:$0xff]  ;;  %v450_v2 = vld [vmem:[%s4072_s21 + $0x138] sm:$0xff] }
  0x27   : > { %v3982_v3 = vld [vmem:[%s4077_s24 + $0x288] sm:$0xff]  ;;  %v455_v5 = vld [vmem:[%s4072_s21 + $0x160] sm:$0xff]  ;;  %v454_v6 = vld [vmem:[%s4072_s21 + $0x158] sm:$0xff] }
  0x28   : > { %3874 = vmatmul.msk.bf16.vlgmr.msra.gmra.mxu3 %vm2219_vm0, %v3982_v3  ;;  %v453_v7 = vld [vmem:[%s4072_s21 + $0x150] sm:$0xff]  ;;  %v3908_v8 = vld [vmem:[%s4077_s24 + $0x38] sm:$0xff]  ;;  %v3962_v10 = vld [vmem:[%s4077_s24 + $0x1e8] sm:$0xff] }
  0x29   : > { %v3935_v9 = vld [vmem:[%s4077_s24 + $0x110] sm:$0xff]  ;;  %v458_v14 = vld [vmem:[%s4072_s21 + $0x178] sm:$0xff]  ;;  %v456_v16 = vld [vmem:[%s4072_s21 + $0x168] sm:$0xff] }
  0x2a   : > { %v457_v15 = vld [vmem:[%s4072_s21 + $0x170] sm:$0xff] }
  0x2b   : > { %680 = vperm.xlu2 %4022, %v422_v17   ;;  %675 = vperm.xlu1 %4021, %v421_v18   ;;  %v3983_v17 = vld [vmem:[%s4077_s24 + $0x290] sm:$0xff] }
  0x2c   : > { %670 = vperm.xlu0 %4020, %v420_v19  }
  0x33   : > { %695 = vperm.xlu2 %4022, %v425_v20   ;;  %690 = vperm.xlu1 %4021, %v424_v21   ;;  %v461_v21 = vld [vmem:[%s4072_s21 + $0x190] sm:$0xff] }
  0x34   : > { %685 = vperm.xlu0 %4020, %v423_v22   ;;  %3822 = vmatmul.msk.bf16.gmra.mxu1 %vm2219_vm0, %v3930_v24  ;;  %v460_v22 = vld [vmem:[%s4072_s21 + $0x188] sm:$0xff]  ;;  %v3909_v24 = vld [vmem:[%s4077_s24 + $0x40] sm:$0xff] }
  0x35   : > { %3795 = vmatmul.msk.bf16.gmra.mxu0 %vm2219_vm0, %v3903_v23  ;;  %3849 = vmatmul.msk.bf16.gmra.mxu2 %vm2219_vm0, %v3957_v25  ;;  %v459_v23 = vld [vmem:[%s4072_s21 + $0x180] sm:$0xff]  ;;  %v3936_v25 = vld [vmem:[%s4077_s24 + $0x118] sm:$0xff] }
  0x38   : > { %3875 = vmatmul.msk.bf16.gmra.mxu3 %vm2219_vm0, %v3983_v17 }
  0x3b   : > { %710 = vperm.xlu2 %4022, %v428_v26   ;;  %705 = vperm.xlu1 %4021, %v427_v27  }
  0x3c   : > { %700 = vperm.xlu0 %4020, %v426_v28   ;;  %v3963_v28 = vld [vmem:[%s4077_s24 + $0x1f0] sm:$0xff] }
  0x43   : > { %725 = vperm.xlu2 %4022, %v431_v29   ;;  %720 = vperm.xlu1 %4021, %v430_v30  }
  0x44   : > { %715 = vperm.xlu0 %4020, %v429_v31   ;;  %3823 = vmatmul.msk.bf16.gmra.mxu1 %vm2219_vm0, %v3931_v33  ;;  %v464_v33 = vld [vmem:[%s4072_s21 + $0x1a8] sm:$0xff] }
  0x45   : > { %3796 = vmatmul.msk.bf16.gmra.mxu0 %vm2219_vm0, %v3904_v32  ;;  %3850 = vmatmul.msk.bf16.gmra.mxu2 %vm2219_vm0, %v3958_v34  ;;  %v463_v34 = vld [vmem:[%s4072_s21 + $0x1a0] sm:$0xff] }
  0x4b   : > { %740 = vperm.xlu2 %4022, %v434_v35   ;;  %735 = vperm.xlu1 %4021, %v433_v36   ;;  %v462_v36 = vld [vmem:[%s4072_s21 + $0x198] sm:$0xff] }
  0x4c   : > { %730 = vperm.xlu0 %4020, %v432_v37  }
  0x53   : > { %755 = vperm.xlu2 %4022, %v437_v38   ;;  %750 = vperm.xlu1 %4021, %v436_v39   ;;  %v3984_v39 = vld [vmem:[%s4077_s24 + $0x298] sm:$0xff] }
  0x54   : > { %745 = vperm.xlu0 %4020, %v435_v40   ;;  %3824 = vmatmul.msk.bf16.gmra.mxu1 %vm2219_vm0, %v3932_v42 }
  0x55   : > { %3797 = vmatmul.msk.bf16.gmra.mxu0 %vm2219_vm0, %v3905_v41  ;;  %3851 = vmatmul.msk.bf16.gmra.mxu2 %vm2219_vm0, %v3959_v43 }
  0x56   : > { %3876 = vmatmul.msk.bf16.gmra.mxu3 %vm2219_vm0, %v3984_v39  ;;  %v478_v39 = vld [vmem:[%s4072_s21 + $0x218] sm:$0xff] }
  0x5b   : > { %770 = vperm.xlu2 %4022, %v440_v44   ;;  %765 = vperm.xlu1 %4021, %v439_v45   ;;  %v467_v44 = vld [vmem:[%s4072_s21 + $0x1c0] sm:$0xff]  ;;  %v466_v45 = vld [vmem:[%s4072_s21 + $0x1b8] sm:$0xff] }
  0x5c   : > { %760 = vperm.xlu0 %4020, %v438_v46  }
  0x63   : > { %785 = vperm.xlu2 %4022, %v443_v47   ;;  %780 = vperm.xlu1 %4021, %v442_v48   ;;  %v465_v47 = vld [vmem:[%s4072_s21 + $0x1b0] sm:$0xff]  ;;  %v3910_v48 = vld [vmem:[%s4077_s24 + $0x48] sm:$0xff] }
  0x64   : > { %775 = vperm.xlu0 %4020, %v441_v49   ;;  %3825 = vmatmul.msk.bf16.gmra.mxu1 %vm2219_vm0, %v3933_v51  ;;  %v3937_v49 = vld [vmem:[%s4077_s24 + $0x120] sm:$0xff] }
  0x65   : > { %3798 = vmatmul.msk.bf16.gmra.mxu0 %vm2219_vm0, %v3906_v50  ;;  %3852 = vmatmul.msk.bf16.gmra.mxu2 %vm2219_vm0, %v3960_v52  ;;  %v3964_v52 = vld [vmem:[%s4077_s24 + $0x1f8] sm:$0xff] }
  0x6b   : > { %800 = vperm.xlu2 %4022, %v446_v53   ;;  %795 = vperm.xlu1 %4021, %v445_v54  }
  0x6c   : > { %790 = vperm.xlu0 %4020, %v444_v55  }
  0x6d   : > { %v4151_v56 = vpop.permute.xlu2 %645 }
  0x73   : > { %815 = vperm.xlu2 %4022, %v449_v57   ;;  %810 = vperm.xlu1 %4021, %v448_v58   ;;  %v470_v58 = vld [vmem:[%s4072_s21 + $0x1d8] sm:$0xff] }
  0x74   : > { %805 = vperm.xlu0 %4020, %v447_v59   ;;  %3826 = vmatmul.msk.bf16.gmra.mxu1 %vm2219_vm0, %v3934_v61  ;;  %v469_v59 = vld [vmem:[%s4072_s21 + $0x1d0] sm:$0xff]  ;;  %v468_v61 = vld [vmem:[%s4072_s21 + $0x1c8] sm:$0xff] }
  0x75   : > { %v4159_v63 = vpop.permute.xlu2 %650  ;;  %3799 = vmatmul.msk.bf16.gmra.mxu0 %vm2219_vm0, %v3907_v60  ;;  %3853 = vmatmul.msk.bf16.gmra.mxu2 %vm2219_vm0, %v3961_v62 }
  0x7b   : > { %830 = vperm.xlu2 %4022, %v452_v0   ;;  %825 = vperm.xlu1 %4021, %v451_v1   ;;  %v3985_v1 = vld [vmem:[%s4077_s24 + $0x2a0] sm:$0xff] }
  0x7c   : > { %820 = vperm.xlu0 %4020, %v450_v2   ;;  %3877 = vmatmul.msk.bf16.gmra.mxu3 %vm2219_vm0, %v3985_v1 }
  0x7d   : > { %v4169_v4 = vpop.permute.xlu2 %665 }
  0x83   : > { %845 = vperm.xlu2 %4022, %v455_v5   ;;  %840 = vperm.xlu1 %4021, %v454_v6  }
  0x84   : > { %835 = vperm.xlu0 %4020, %v453_v7   ;;  %3827 = vmatmul.msk.bf16.gmra.mxu1 %vm2219_vm0, %v3935_v9  ;;  %v473_v7 = vld [vmem:[%s4072_s21 + $0x1f0] sm:$0xff] }
  0x85   : > { %v4177_v11 = vpop.permute.xlu2 %680  ;;  %v636_v12 = vpop.permute.xlu1 %635  ;;  %3800 = vmatmul.msk.bf16.gmra.mxu0 %vm2219_vm0, %v3908_v8  ;;  %3854 = vmatmul.msk.bf16.gmra.mxu2 %vm2219_vm0, %v3962_v10  ;;  %v472_v8 = vld [vmem:[%s4072_s21 + $0x1e8] sm:$0xff]  ;;  %v471_v10 = vld [vmem:[%s4072_s21 + $0x1e0] sm:$0xff] }
  0x86   : > { %v626_v13 = vpop.permute.xlu0 %625 }
  0x8b   : > { %860 = vperm.xlu2 %4022, %v458_v14   ;;  %855 = vperm.xlu1 %4021, %v457_v15  }
  0x8c   : > { %850 = vperm.xlu0 %4020, %v456_v16   ;;  %v3965_v16 = vld [vmem:[%s4077_s24 + $0x200] sm:$0xff] }
  0x8d   : > { %v4187_v18 = vpop.permute.xlu2 %695  ;;  %v4189_v19 = vpop.permute.xlu1 %640 }
  0x8e   : > { %v631_v20 = vpop.permute.xlu0 %630 }
  0x91   : > { %v4203_v27 = vpop.f32.mrf.mxu1 }
  0x92   : > { %v2547_v26 = vpop.f32.mrf.mxu0 }
  0x93   : > { %v2548_v29 = vadd.f32 %v2547_v26, %v626_v13  ;;  %875 = vperm.xlu2 %4022, %v461_v21   ;;  %870 = vperm.xlu1 %4021, %v460_v22   ;;  %v3938_v13 = vld [vmem:[%s4077_s24 + $0x128] sm:$0xff] }
  0x94   : > { %865 = vperm.xlu0 %4020, %v459_v23   ;;  %3828 = vmatmul.msk.bf16.gmra.mxu1 %vm2219_vm0, %v3936_v25  ;;  %v476_v22 = vld [vmem:[%s4072_s21 + $0x208] sm:$0xff] }
  0x95   : > { %3077 = vst [vmem:[%s4201_s27] sm:$0xff] %v2548_v29  ;;  %v4207_v30 = vpop.permute.xlu2 %710  ;;  %v4209_v31 = vpop.permute.xlu1 %660  ;;  %3801 = vmatmul.msk.bf16.gmra.mxu0 %vm2219_vm0, %v3909_v24  ;;  %3855 = vmatmul.msk.bf16.gmra.mxu2 %vm2219_vm0, %v3963_v28  ;;  %v474_v24 = vld [vmem:[%s4072_s21 + $0x1f8] sm:$0xff]  ;;  %v3986_v28 = vld [vmem:[%s4077_s24 + $0x2a8] sm:$0xff] }
  0x96   : > { %v4213_v32 = vpop.permute.xlu0 %655  ;;  %3878 = vmatmul.msk.bf16.gmra.mxu3 %vm2219_vm0, %v3986_v28  ;;  %v3967_v28 = vld [vmem:[%s4077_s24 + $0x210] sm:$0xff] }
  0x98   : > { %v4218_v35 = vpop.f32.mrf.mxu2 }
  0x99   : > { %v4221_v38 = vpop.f32.mrf.mxu1 }
  0x9a   : > { %v2549_v37 = vpop.f32.mrf.mxu0 }
  0x9b   : > { %v2550_v40 = vadd.f32 %v2549_v37, %v631_v20  ;;  %890 = vperm.xlu2 %4022, %v464_v33   ;;  %885 = vperm.xlu1 %4021, %v463_v34   ;;  %v479_v37 = vld [vmem:[%s4072_s21 + $0x220] sm:$0xff] }
  0x9c   : > { %880 = vperm.xlu0 %4020, %v462_v36  }
  0x9d   : > { %3078 = vst [vmem:[%s4201_s27 + $0x8] sm:$0xff] %v2550_v40  ;;  %v4226_v41 = vpop.permute.xlu2 %725  ;;  %v4228_v42 = vpop.permute.xlu1 %675 }
  0x9e   : > { %v4230_v43 = vpop.permute.xlu0 %670 }
  0xa0   : > { %v4234_v46 = vpop.f32.mrf.mxu2 }
  0xa1   : > { %v4239_v51 = vpop.f32.mrf.mxu1 }
  0xa2   : > { %v2552_v50 = vpop.f32.mrf.mxu0 }
  0xa3   : > { %v2553_v53 = vadd.f32 %v2552_v50, %v636_v12  ;;  %905 = vperm.xlu2 %4022, %v467_v44   ;;  %900 = vperm.xlu1 %4021, %v466_v45   ;;  %v3911_v12 = vld [vmem:[%s4077_s24 + $0x50] sm:$0xff] }
  0xa4   : > { %895 = vperm.xlu0 %4020, %v465_v47   ;;  %3829 = vmatmul.msk.bf16.gmra.mxu1 %vm2219_vm0, %v3937_v49  ;;  %v477_v44 = vld [vmem:[%s4072_s21 + $0x210] sm:$0xff]  ;;  %v3966_v49 = vld [vmem:[%s4077_s24 + $0x208] sm:$0xff] }
  0xa5   : > { %3079 = vst [vmem:[%s4201_s27 + $0x10] sm:$0xff] %v2553_v53  ;;  %v4243_v54 = vpop.permute.xlu2 %740  ;;  %v4245_v55 = vpop.permute.xlu1 %690  ;;  %3802 = vmatmul.msk.bf16.gmra.mxu0 %vm2219_vm0, %v3910_v48  ;;  %3856 = vmatmul.msk.bf16.gmra.mxu2 %vm2219_vm0, %v3964_v52  ;;  %v3939_v45 = vld [vmem:[%s4077_s24 + $0x130] sm:$0xff] }
  0xa6   : > { %v4249_v57 = vpop.permute.xlu0 %685 }
  0xa8   : > { %v4254_v60 = vpop.f32.mrf.mxu2 }
  0xa9   : > { %v4257_v0 = vpop.f32.mrf.mxu1 }
  0xaa   : > { %v2554_v62 = vpop.f32.mrf.mxu0 }
  0xab   : > { %v2555_v2 = vadd.f32 %v2554_v62, %v4189_v19  ;;  %920 = vperm.xlu2 %4022, %v470_v58   ;;  %915 = vperm.xlu1 %4021, %v469_v59   ;;  %v482_v59 = vld [vmem:[%s4072_s21 + $0x238] sm:$0xff]  ;;  %v480_v62 = vld [vmem:[%s4072_s21 + $0x228] sm:$0xff] }
  0xac   : > { %910 = vperm.xlu0 %4020, %v468_v61  }
  0xad   : > { %3080 = vst [vmem:[%s4201_s27 + $0x18] sm:$0xff] %v2555_v2  ;;  %v4263_v3 = vpop.permute.xlu2 %755  ;;  %v4265_v5 = vpop.permute.xlu1 %705 }
  0xae   : > { %v4267_v6 = vpop.permute.xlu0 %700 }
  0xb0   : > { %v4271_v9 = vpop.f32.mrf.mxu2 }
  0xb1   : > { %v4276_v15 = vpop.f32.mrf.mxu1 }
  0xb2   : > { %v2557_v14 = vpop.f32.mrf.mxu0 }
  0xb3   : > { %v2558_v17 = vadd.f32 %v2557_v14, %v4151_v56  ;;  %935 = vperm.xlu2 %4022, %v473_v7   ;;  %930 = vperm.xlu1 %4021, %v472_v8   ;;  %v475_v56 = vld [vmem:[%s4072_s21 + $0x200] sm:$0xff]  ;;  %v3987_v7 = vld [vmem:[%s4077_s24 + $0x2b0] sm:$0xff] }
  0xb4   : > { %925 = vperm.xlu0 %4020, %v471_v10   ;;  %3830 = vmatmul.msk.bf16.gmra.mxu1 %vm2219_vm0, %v3938_v13  ;;  %v485_v14 = vld [vmem:[%s4072_s21 + $0x250] sm:$0xff] }
  0xb5   : > { %3081 = vst [vmem:[%s4201_s27 + $0x20] sm:$0xff] %v2558_v17  ;;  %v4281_v19 = vpop.permute.xlu2 %770  ;;  %v4283_v20 = vpop.permute.xlu1 %720  ;;  %3803 = vmatmul.msk.bf16.gmra.mxu0 %vm2219_vm0, %v3911_v12  ;;  %3857 = vmatmul.msk.bf16.gmra.mxu2 %vm2219_vm0, %v3965_v16  ;;  %v484_v16 = vld [vmem:[%s4072_s21 + $0x248] sm:$0xff] }
  0xb6   : > { %v4287_v21 = vpop.permute.xlu0 %715  ;;  %3879 = vmatmul.msk.bf16.gmra.mxu3 %vm2219_vm0, %v3987_v7 }
  0xb8   : > { %v4292_v23 = vpop.f32.mrf.mxu2 }
  0xb9   : > { %v4295_v26 = vpop.f32.mrf.mxu1 }
  0xba   : > { %v2559_v25 = vpop.f32.mrf.mxu0 }
  0xbb   : > { %v2560_v29 = vadd.f32 %v2559_v25, %v4159_v63  ;;  %950 = vperm.xlu2 %4022, %v476_v22   ;;  %945 = vperm.xlu1 %4021, %v475_v56   ;;  %v3912_v63 = vld [vmem:[%s4077_s24 + $0x58] sm:$0xff]  ;;  %v483_v22 = vld [vmem:[%s4072_s21 + $0x240] sm:$0xff] }
  0xbc   : > { %940 = vperm.xlu0 %4020, %v474_v24   ;;  %v3940_v56 = vld [vmem:[%s4077_s24 + $0x138] sm:$0xff] }
  0xbd   : > { %3082 = vst [vmem:[%s4201_s27 + $0x28] sm:$0xff] %v2560_v29  ;;  %v4301_v33 = vpop.permute.xlu2 %785  ;;  %v4303_v34 = vpop.permute.xlu1 %735 }
  0xbe   : > { %v4305_v36 = vpop.permute.xlu0 %730 }
  0xc0   : > { %v4309_v40 = vpop.f32.mrf.mxu2 }
  0xc1   : > { %v4314_v48 = vpop.f32.mrf.mxu1 }
  0xc2   : > { %v2562_v47 = vpop.f32.mrf.mxu0 }
  0xc3   : > { %v2563_v50 = vadd.f32 %v2562_v47, %v4213_v32  ;;  %965 = vperm.xlu2 %4022, %v479_v37   ;;  %960 = vperm.xlu1 %4021, %v478_v39   ;;  %v481_v32 = vld [vmem:[%s4072_s21 + $0x230] sm:$0xff]  ;;  %v486_v47 = vld [vmem:[%s4072_s21 + $0x258] sm:$0xff] }
  0xc4   : > { %955 = vperm.xlu0 %4020, %v477_v44   ;;  %3831 = vmatmul.msk.bf16.gmra.mxu1 %vm2219_vm0, %v3939_v45 }
  0xc5   : > { %3083 = vst [vmem:[%s4201_s27 + $0x30] sm:$0xff] %v2563_v50  ;;  %v4319_v52 = vpop.permute.xlu2 %800  ;;  %v4321_v53 = vpop.permute.xlu1 %750  ;;  %3804 = vmatmul.msk.bf16.gmra.mxu0 %vm2219_vm0, %v3912_v63  ;;  %3858 = vmatmul.msk.bf16.gmra.mxu2 %vm2219_vm0, %v3966_v49  ;;  %v488_v63 = vld [vmem:[%s4072_s21 + $0x268] sm:$0xff] }
  0xc6   : > { %v4325_v58 = vpop.permute.xlu0 %745 }
  0xc8   : > { %v4330_v61 = vpop.f32.mrf.mxu2 }
  0xc9   : > { %v4333_v2 = vpop.f32.mrf.mxu1 }
  0xca   : > { %v2564_v1 = vpop.f32.mrf.mxu0 }
  0xcb   : > { %v2565_v8 = vadd.f32 %v2564_v1, %v4209_v31  ;;  %980 = vperm.xlu2 %4022, %v482_v59   ;;  %975 = vperm.xlu1 %4021, %v481_v32   ;;  %v3913_v31 = vld [vmem:[%s4077_s24 + $0x60] sm:$0xff]  ;;  %v3988_v59 = vld [vmem:[%s4077_s24 + $0x2b8] sm:$0xff] }
  0xcc   : > { %970 = vperm.xlu0 %4020, %v480_v62   ;;  %3880 = vmatmul.msk.bf16.gmra.mxu3 %vm2219_vm0, %v3988_v59 }
  0xcd   : > { %3084 = vst [vmem:[%s4201_s27 + $0x38] sm:$0xff] %v2565_v8  ;;  %v4339_v10 = vpop.permute.xlu2 %815  ;;  %v4341_v12 = vpop.permute.xlu1 %765  ;;  %v491_v8 = vld [vmem:[%s4072_s21 + $0x280] sm:$0xff] }
  0xce   : > { %v4343_v13 = vpop.permute.xlu0 %760 }
  0xd0   : > { %v4347_v17 = vpop.f32.mrf.mxu2 }
  0xd1   : > { %v4352_v25 = vpop.f32.mrf.mxu1 }
  0xd2   : > { %v2567_v24 = vpop.f32.mrf.mxu0 }
  0xd3   : > { %v2568_v29 = vadd.f32 %v2567_v24, %v4169_v4  ;;  %995 = vperm.xlu2 %4022, %v485_v14   ;;  %990 = vperm.xlu1 %4021, %v484_v16   ;;  %v487_v4 = vld [vmem:[%s4072_s21 + $0x260] sm:$0xff]  ;;  %v490_v14 = vld [vmem:[%s4072_s21 + $0x278] sm:$0xff] }
  0xd4   : > { %985 = vperm.xlu0 %4020, %v483_v22   ;;  %3832 = vmatmul.msk.bf16.gmra.mxu1 %vm2219_vm0, %v3940_v56  ;;  %v489_v22 = vld [vmem:[%s4072_s21 + $0x270] sm:$0xff] }
  0xd5   : > { %3085 = vst [vmem:[%s4201_s27 + $0x40] sm:$0xff] %v2568_v29  ;;  %v4357_v37 = vpop.permute.xlu2 %830  ;;  %v4359_v39 = vpop.permute.xlu1 %780  ;;  %3805 = vmatmul.msk.bf16.gmra.mxu0 %vm2219_vm0, %v3913_v31  ;;  %3859 = vmatmul.msk.bf16.gmra.mxu2 %vm2219_vm0, %v3967_v28  ;;  %v3941_v31 = vld [vmem:[%s4077_s24 + $0x140] sm:$0xff]  ;;  %v3968_v28 = vld [vmem:[%s4077_s24 + $0x218] sm:$0xff] }
  0xd6   : > { %5287 = vst [vmem:[#allocation2_spill] sm:$0xff] %v4357_v37  ;;  %v4363_v44 = vpop.permute.xlu0 %775  ;;  %v495_v37 = vld [vmem:[%s4072_s21 + $0x2a0] sm:$0xff] }
  0xd8   : > { %v4368_v45 = vpop.f32.mrf.mxu2 }
  0xd9   : > { %v4371_v50 = vpop.f32.mrf.mxu1 }
  0xda   : > { %v2569_v49 = vpop.f32.mrf.mxu0 }
  0xdb   : > { %v2570_v32 = vadd.f32 %v2569_v49, %v4230_v43  ;;  %1010 = vperm.xlu2 %4022, %v488_v63   ;;  %1005 = vperm.xlu1 %4021, %v487_v4   ;;  %v3914_v43 = vld [vmem:[%s4077_s24 + $0x68] sm:$0xff]  ;;  %v494_v49 = vld [vmem:[%s4072_s21 + $0x298] sm:$0xff] }
  0xdc   : > { %1000 = vperm.xlu0 %4020, %v486_v47  }
  0xdd   : > { %3086 = vst [vmem:[%s4201_s27 + $0x48] sm:$0xff] %v2570_v32  ;;  %v4377_v62 = vpop.permute.xlu2 %845  ;;  %v4379_v1 = vpop.permute.xlu1 %795  ;;  %v492_v32 = vld [vmem:[%s4072_s21 + $0x288] sm:$0xff] }
  0xde   : > { %5288 = vst [vmem:[#allocation3_spill] sm:$0xff] %v4377_v62  ;;  %v4381_v7 = vpop.permute.xlu0 %790 }
  0xe0   : > { %v4385_v16 = vpop.f32.mrf.mxu2 }
  0xe1   : > { %v4390_v24 = vpop.f32.mrf.mxu1 }
  0xe2   : > { %v2572_v56 = vpop.f32.mrf.mxu0 }
  0xe3   : > { %v2573_v29 = vadd.f32 %v2572_v56, %v4228_v42  ;;  %1025 = vperm.xlu2 %4022, %v491_v8   ;;  %1020 = vperm.xlu1 %4021, %v490_v14   ;;  %v493_v42 = vld [vmem:[%s4072_s21 + $0x290] sm:$0xff] }
  0xe4   : > { %1015 = vperm.xlu0 %4020, %v489_v22   ;;  %3833 = vmatmul.msk.bf16.gmra.mxu1 %vm2219_vm0, %v3941_v31  ;;  %v3989_v22 = vld [vmem:[%s4077_s24 + $0x2c0] sm:$0xff] }
  0xe5   : > { %3087 = vst [vmem:[%s4201_s27 + $0x50] sm:$0xff] %v2573_v29  ;;  %v4395_v63 = vpop.permute.xlu2 %860  ;;  %v4397_v4 = vpop.permute.xlu1 %810  ;;  %3806 = vmatmul.msk.bf16.gmra.mxu0 %vm2219_vm0, %v3914_v43  ;;  %3860 = vmatmul.msk.bf16.gmra.mxu2 %vm2219_vm0, %v3968_v28  ;;  %v497_v29 = vld [vmem:[%s4072_s21 + $0x2b0] sm:$0xff] }
  0xe6   : > { %5289 = vst [vmem:[#allocation4_spill] sm:$0xff] %v4395_v63  ;;  %v4401_v47 = vpop.permute.xlu0 %805  ;;  %3881 = vmatmul.msk.bf16.gmra.mxu3 %vm2219_vm0, %v3989_v22  ;;  %v496_v63 = vld [vmem:[%s4072_s21 + $0x2a8] sm:$0xff] }
  0xe8   : > { %v4406_v59 = vpop.f32.mrf.mxu2 }
  0xe9   : > { %v4409_v14 = vpop.f32.mrf.mxu1 }
  0xea   : > { %v2574_v8 = vpop.f32.mrf.mxu0 }
  0xeb   : > { %v2575_v43 = vadd.f32 %v2574_v8, %v4177_v11  ;;  %1040 = vperm.xlu2 %4022, %v494_v49   ;;  %1035 = vperm.xlu1 %4021, %v493_v42   ;;  %v3915_v11 = vld [vmem:[%s4077_s24 + $0x70] sm:$0xff]  ;;  %v3942_v49 = vld [vmem:[%s4077_s24 + $0x148] sm:$0xff]  ;;  %v3969_v8 = vld [vmem:[%s4077_s24 + $0x220] sm:$0xff] }
  0xec   : > { %1030 = vperm.xlu0 %4020, %v492_v32  }
  0xed   : > { %3088 = vst [vmem:[%s4201_s27 + $0x58] sm:$0xff] %v2575_v43  ;;  %v4415_v31 = vpop.permute.xlu2 %875  ;;  %v4417_v56 = vpop.permute.xlu1 %825 }
  0xee   : > { %5290 = vst [vmem:[#allocation5_spill] sm:$0xff] %v4415_v31  ;;  %v4419_v28 = vpop.permute.xlu0 %820 }
  0xef   : > { %5291 = vst [vmem:[#allocation6_spill] sm:$0xff] %v4417_v56 }
  0xf0   : > { %5292 = vst [vmem:[#allocation7_spill] sm:$0xff] %v4419_v28  ;;  %v4423_v62 = vpop.f32.mrf.mxu2  ;;  %v500_v28 = vld [vmem:[%s4072_s21 + $0x2c8] sm:$0xff] }
  0xf1   : > { %v4428_v32 = vpop.f32.mrf.mxu1 }
  0xf2   : > { %v2577_v42 = vpop.f32.mrf.mxu0 }
  0xf3   : > { %v2578_v22 = vadd.f32 %v2577_v42, %v4249_v57  ;;  %1055 = vperm.xlu2 %4022, %v497_v29   ;;  %1050 = vperm.xlu1 %4021, %v496_v63   ;;  %v499_v57 = vld [vmem:[%s4072_s21 + $0x2c0] sm:$0xff] }
  0xf4   : > { %1045 = vperm.xlu0 %4020, %v495_v37   ;;  %3834 = vmatmul.msk.bf16.gmra.mxu1 %vm2219_vm0, %v3942_v49  ;;  %v498_v37 = vld [vmem:[%s4072_s21 + $0x2b8] sm:$0xff] }
  0xf5   : > { %3089 = vst [vmem:[%s4201_s27 + $0x60] sm:$0xff] %v2578_v22  ;;  %v4433_v43 = vpop.permute.xlu2 %890  ;;  %v4435_v31 = vpop.permute.xlu1 %840  ;;  %3807 = vmatmul.msk.bf16.gmra.mxu0 %vm2219_vm0, %v3915_v11  ;;  %3861 = vmatmul.msk.bf16.gmra.mxu2 %vm2219_vm0, %v3969_v8  ;;  %v3990_v22 = vld [vmem:[%s4077_s24 + $0x2c8] sm:$0xff] }
  0xf6   : > { %5293 = vst [vmem:[#allocation8_spill] sm:$0xff] %v4433_v43  ;;  %v4439_v56 = vpop.permute.xlu0 %835  ;;  %3882 = vmatmul.msk.bf16.gmra.mxu3 %vm2219_vm0, %v3990_v22  ;;  %v3943_v22 = vld [vmem:[%s4077_s24 + $0x150] sm:$0xff] }
  0xf7   : > { %5294 = vst [vmem:[#allocation9_spill] sm:$0xff] %v4435_v31 }
  0xf8   : > { %5295 = vst [vmem:[#allocation10_spill] sm:$0xff] %v4439_v56  ;;  %v4444_v29 = vpop.f32.mrf.mxu2  ;;  %v4458_v56 = vpop.f32.mrf.mxu3 }
  0xf9   : > { %5296 = vst [vmem:[#allocation11_spill] sm:$0xff] %v4444_v29  ;;  %v4447_v42 = vpop.f32.mrf.mxu1 }
  0xfa   : > { %v2579_v63 = vpop.f32.mrf.mxu0  ;;  %5299 = vst [vmem:[#allocation14_spill] sm:$0xff] %v4458_v56 }
  0xfb   : > { %v2580_v11 = vadd.f32 %v2579_v63, %v4245_v55  ;;  %1070 = vperm.xlu2 %4022, %v500_v28   ;;  %1065 = vperm.xlu1 %4021, %v499_v57   ;;  %v503_v55 = vld [vmem:[%s4072_s21 + $0x2e0] sm:$0xff]  ;;  %v502_v28 = vld [vmem:[%s4072_s21 + $0x2d8] sm:$0xff]  ;;  %v501_v57 = vld [vmem:[%s4072_s21 + $0x2d0] sm:$0xff] }
  0xfc   : > { %1060 = vperm.xlu0 %4020, %v498_v37   ;;  %v3916_v37 = vld [vmem:[%s4077_s24 + $0x78] sm:$0xff] }
  0xfd   : > { %3090 = vst [vmem:[%s4201_s27 + $0x68] sm:$0xff] %v2580_v11  ;;  %v906_v49 = vpop.permute.xlu2 %905  ;;  %v4453_v8 = vpop.permute.xlu1 %855 }
  0xfe   : > { %5297 = vst [vmem:[#allocation12_spill] sm:$0xff] %v4453_v8  ;;  %v2688_v43 = vadd.f32 %v4239_v51, %v906_v49  ;;  %v4456_v31 = vpop.permute.xlu0 %850  ;;  %v3970_v8 = vld [vmem:[%s4077_s24 + $0x228] sm:$0xff] }
  0xff   : > { %5298 = vst [vmem:[#allocation13_spill] sm:$0xff] %v4456_v31 }
 0x100   : > { %3133 = vst [vmem:[%s4201_s27 + $0x1c0] sm:$0xff] %v2688_v43  ;;  %v4463_v63 = vpop.f32.mrf.mxu2 }
 0x101   : > { %5300 = vst [vmem:[#allocation15_spill] sm:$0xff] %v4463_v63  ;;  %v4468_v11 = vpop.f32.mrf.mxu1  ;;  %v3971_v63 = vld [vmem:[%s4077_s24 + $0x230] sm:$0xff] }
 0x102   : > { %v2582_v29 = vpop.f32.mrf.mxu0 }
 0x103   : > { %v2583_v51 = vadd.f32 %v2582_v29, %v4187_v18  ;;  %1085 = vperm.xlu2 %4022, %v503_v55   ;;  %1080 = vperm.xlu1 %4021, %v502_v28   ;;  %v4481_v18 = vpop.f32.mrf.mxu3  ;;  %v506_v29 = vld [vmem:[%s4072_s21 + $0x2f8] sm:$0xff]  ;;  %v505_v55 = vld [vmem:[%s4072_s21 + $0x2f0] sm:$0xff] }
 0x104   : > { %1075 = vperm.xlu0 %4020, %v501_v57   ;;  %3835 = vmatmul.msk.bf16.gmra.mxu1 %vm2219_vm0, %v3943_v22  ;;  %5303 = vst [vmem:[#allocation18_spill] sm:$0xff] %v4481_v18  ;;  %v504_v57 = vld [vmem:[%s4072_s21 + $0x2e8] sm:$0xff] }
 0x105   : > { %3091 = vst [vmem:[%s4201_s27 + $0x70] sm:$0xff] %v2583_v51  ;;  %v921_v43 = vpop.permute.xlu2 %920  ;;  %v4473_v49 = vpop.permute.xlu1 %870  ;;  %3808 = vmatmul.msk.bf16.gmra.mxu0 %vm2219_vm0, %v3916_v37  ;;  %3862 = vmatmul.msk.bf16.gmra.mxu2 %vm2219_vm0, %v3970_v8 }
 0x106   : > { %5301 = vst [vmem:[#allocation16_spill] sm:$0xff] %v4473_v49  ;;  %v2695_v56 = vadd.f32 %v4295_v26, %v921_v43  ;;  %v4478_v31 = vpop.permute.xlu0 %865  ;;  %v3991_v26 = vld [vmem:[%s4077_s24 + $0x2d0] sm:$0xff] }
 0x107   : > { %5302 = vst [vmem:[#allocation17_spill] sm:$0xff] %v4478_v31  ;;  %3883 = vmatmul.msk.bf16.gmra.mxu3 %vm2219_vm0, %v3991_v26  ;;  %v3944_v26 = vld [vmem:[%s4077_s24 + $0x158] sm:$0xff] }
 0x108   : > { %3136 = vst [vmem:[%s4201_s27 + $0x1d8] sm:$0xff] %v2695_v56  ;;  %v4486_v28 = vpop.f32.mrf.mxu2 }
 0x109   : > { %v4489_v22 = vpop.f32.mrf.mxu1 }
 0x10a   : > { %v2584_v37 = vpop.f32.mrf.mxu0 }
 0x10b   : > { %v2585_v51 = vadd.f32 %v2584_v37, %v4267_v6  ;;  %1100 = vperm.xlu2 %4022, %v506_v29   ;;  %1095 = vperm.xlu1 %4021, %v505_v55   ;;  %v4500_v49 = vpop.f32.mrf.mxu3  ;;  %v509_v6 = vld [vmem:[%s4072_s21 + $0x310] sm:$0xff]  ;;  %v508_v29 = vld [vmem:[%s4072_s21 + $0x308] sm:$0xff]  ;;  %v507_v55 = vld [vmem:[%s4072_s21 + $0x300] sm:$0xff] }
 0x10c   : > { %1090 = vperm.xlu0 %4020, %v504_v57   ;;  %5306 = vst [vmem:[#allocation21_spill] sm:$0xff] %v4500_v49  ;;  %v3917_v57 = vld [vmem:[%s4077_s24 + $0x80] sm:$0xff] }
 0x10d   : > { %3092 = vst [vmem:[%s4201_s27 + $0x78] sm:$0xff] %v2585_v51  ;;  %v936_v56 = vpop.permute.xlu2 %935  ;;  %v4495_v8 = vpop.permute.xlu1 %885 }
 0x10e   : > { %5304 = vst [vmem:[#allocation19_spill] sm:$0xff] %v4495_v8  ;;  %v2703_v43 = vadd.f32 %v4352_v25, %v936_v56  ;;  %v4498_v18 = vpop.permute.xlu0 %880 }
 0x10f   : > { %5305 = vst [vmem:[#allocation20_spill] sm:$0xff] %v4498_v18 }
 0x110   : > { %3139 = vst [vmem:[%s4201_s27 + $0x1f0] sm:$0xff] %v2703_v43  ;;  %v4505_v37 = vpop.f32.mrf.mxu2 }
 0x111   : > { %v4510_v51 = vpop.f32.mrf.mxu1 }
 0x112   : > { %v2587_v31 = vpop.f32.mrf.mxu0 }
 0x113   : > { %v2588_v25 = vadd.f32 %v2587_v31, %v4265_v5  ;;  %1115 = vperm.xlu2 %4022, %v509_v6   ;;  %1110 = vperm.xlu1 %4021, %v508_v29   ;;  %v4521_v29 = vpop.f32.mrf.mxu3 }
 0x114   : > { %1105 = vperm.xlu0 %4020, %v507_v55   ;;  %3836 = vmatmul.msk.bf16.gmra.mxu1 %vm2219_vm0, %v3944_v26  ;;  %5307 = vst [vmem:[#allocation22_spill] sm:$0xff] %v4521_v29  ;;  %v512_v55 = vld [vmem:[%s4072_s21 + $0x328] sm:$0xff]  ;;  %v510_v26 = vld [vmem:[%s4072_s21 + $0x318] sm:$0xff] }
 0x115   : > { %3093 = vst [vmem:[%s4201_s27 + $0x80] sm:$0xff] %v2588_v25  ;;  %v951_v56 = vpop.permute.xlu2 %950  ;;  %v901_v43 = vpop.permute.xlu1 %900  ;;  %3809 = vmatmul.msk.bf16.gmra.mxu0 %vm2219_vm0, %v3917_v57  ;;  %3863 = vmatmul.msk.bf16.gmra.mxu2 %vm2219_vm0, %v3971_v63  ;;  %v511_v25 = vld [vmem:[%s4072_s21 + $0x320] sm:$0xff] }
 0x116   : > { %v2710_v8 = vadd.f32 %v4409_v14, %v951_v56  ;;  %v2685_v5 = vadd.f32 %v4221_v38, %v901_v43  ;;  %v896_v31 = vpop.permute.xlu0 %895  ;;  %v3992_v38 = vld [vmem:[%s4077_s24 + $0x2d8] sm:$0xff] }
 0x117   : > { %v2683_v6 = vadd.f32 %v4203_v27, %v896_v31  ;;  %3884 = vmatmul.msk.bf16.gmra.mxu3 %vm2219_vm0, %v3992_v38  ;;  %v515_v31 = vld [vmem:[%s4072_s21 + $0x340] sm:$0xff] }
 0x118   : > { %3142 = vst [vmem:[%s4201_s27 + $0x208] sm:$0xff] %v2710_v8  ;;  %v4527_v57 = vpop.f32.mrf.mxu2  ;;  %v3945_v38 = vld [vmem:[%s4077_s24 + $0x160] sm:$0xff] }
 0x119   : > { %3132 = vst [vmem:[%s4201_s27 + $0x1b8] sm:$0xff] %v2685_v5  ;;  %v2724_v14 = vpop.f32.mrf.mxu1 }
 0x11a   : > { %3131 = vst [vmem:[%s4201_s27 + $0x1b0] sm:$0xff] %v2683_v6  ;;  %v2589_v18 = vpop.f32.mrf.mxu0  ;;  %v514_v6 = vld [vmem:[%s4072_s21 + $0x338] sm:$0xff] }
 0x11b   : > { %v2590_v63 = vadd.f32 %v2589_v18, %v4207_v30  ;;  %1130 = vperm.xlu2 %4022, %v512_v55   ;;  %1125 = vperm.xlu1 %4021, %v511_v25   ;;  %v4538_v18 = vpop.f32.mrf.mxu3  ;;  %v513_v25 = vld [vmem:[%s4072_s21 + $0x330] sm:$0xff] }
 0x11c   : > { %1120 = vperm.xlu0 %4020, %v510_v26   ;;  %5308 = vst [vmem:[#allocation23_spill] sm:$0xff] %v4538_v18  ;;  %v3918_v26 = vld [vmem:[%s4077_s24 + $0x88] sm:$0xff] }
 0x11d   : > { %3094 = vst [vmem:[%s4201_s27 + $0x88] sm:$0xff] %v2590_v63  ;;  %v966_v27 = vpop.permute.xlu2 %965  ;;  %v916_v8 = vpop.permute.xlu1 %915 }
 0x11e   : > { %v2718_v56 = vadd.f32 %v4468_v11, %v966_v27  ;;  %v2693_v43 = vadd.f32 %v4276_v15, %v916_v8  ;;  %v911_v5 = vpop.permute.xlu0 %910  ;;  %v3972_v15 = vld [vmem:[%s4077_s24 + $0x238] sm:$0xff] }
 0x11f   : > { %v2690_v30 = vadd.f32 %v4257_v0, %v911_v5 }
 0x120   : > { %3145 = vst [vmem:[%s4201_s27 + $0x220] sm:$0xff] %v2718_v56  ;;  %v4544_v55 = vpop.f32.mrf.mxu2 }
 0x121   : > { %3135 = vst [vmem:[%s4201_s27 + $0x1d0] sm:$0xff] %v2693_v43  ;;  %v4550_v63 = vpop.f32.mrf.mxu1 }
 0x122   : > { %3134 = vst [vmem:[%s4201_s27 + $0x1c8] sm:$0xff] %v2690_v30  ;;  %v2592_v11 = vpop.f32.mrf.mxu0 }
 0x123   : > { %v2593_v0 = vadd.f32 %v2592_v11, %v4287_v21  ;;  %1145 = vperm.xlu2 %4022, %v515_v31   ;;  %1140 = vperm.xlu1 %4021, %v514_v6   ;;  %v4560_v30 = vpop.f32.mrf.mxu3  ;;  %v518_v31 = vld [vmem:[%s4072_s21 + $0x358] sm:$0xff]  ;;  %v517_v6 = vld [vmem:[%s4072_s21 + $0x350] sm:$0xff] }
 0x124   : > { %1135 = vperm.xlu0 %4020, %v513_v25   ;;  %3837 = vmatmul.msk.bf16.gmra.mxu1 %vm2219_vm0, %v3945_v38  ;;  %5309 = vst [vmem:[#allocation24_spill] sm:$0xff] %v4560_v30  ;;  %v3993_v38 = vld [vmem:[%s4077_s24 + $0x2e0] sm:$0xff] }
 0x125   : > { %3095 = vst [vmem:[%s4201_s27 + $0x90] sm:$0xff] %v2593_v0  ;;  %v981_v27 = vpop.permute.xlu2 %980  ;;  %v931_v8 = vpop.permute.xlu1 %930  ;;  %3810 = vmatmul.msk.bf16.gmra.mxu0 %vm2219_vm0, %v3918_v26  ;;  %3864 = vmatmul.msk.bf16.gmra.mxu2 %vm2219_vm0, %v3972_v15  ;;  %v516_v26 = vld [vmem:[%s4072_s21 + $0x348] sm:$0xff] }
 0x126   : > { %v2725_v56 = vadd.f32 %v2724_v14, %v981_v27  ;;  %v2700_v43 = vadd.f32 %v4333_v2, %v931_v8  ;;  %v926_v21 = vpop.permute.xlu0 %925 }
 0x127   : > { %v2698_v5 = vadd.f32 %v4314_v48, %v926_v21  ;;  %3885 = vmatmul.msk.bf16.gmra.mxu3 %vm2219_vm0, %v3993_v38  ;;  %v3973_v38 = vld [vmem:[%s4077_s24 + $0x240] sm:$0xff] }
 0x128   : > { %3148 = vst [vmem:[%s4201_s27 + $0x238] sm:$0xff] %v2725_v56  ;;  %v4566_v25 = vpop.f32.mrf.mxu2 }
 0x129   : > { %3138 = vst [vmem:[%s4201_s27 + $0x1e8] sm:$0xff] %v2700_v43  ;;  %v4570_v2 = vpop.f32.mrf.mxu1  ;;  %v520_v43 = vld [vmem:[%s4072_s21 + $0x368] sm:$0xff] }
 0x12a   : > { %3137 = vst [vmem:[%s4201_s27 + $0x1e0] sm:$0xff] %v2698_v5  ;;  %v2594_v14 = vpop.f32.mrf.mxu0  ;;  %v519_v5 = vld [vmem:[%s4072_s21 + $0x360] sm:$0xff] }
 0x12b   : > { %v2595_v48 = vadd.f32 %v2594_v14, %v4283_v20  ;;  %1160 = vperm.xlu2 %4022, %v518_v31   ;;  %1155 = vperm.xlu1 %4021, %v517_v6   ;;  %v4578_v56 = vpop.f32.mrf.mxu3  ;;  %v521_v20 = vld [vmem:[%s4072_s21 + $0x370] sm:$0xff]  ;;  %v3946_v6 = vld [vmem:[%s4077_s24 + $0x168] sm:$0xff] }
 0x12c   : > { %1150 = vperm.xlu0 %4020, %v516_v26   ;;  %5310 = vst [vmem:[#allocation25_spill] sm:$0xff] %v4578_v56  ;;  %v3919_v31 = vld [vmem:[%s4077_s24 + $0x90] sm:$0xff] }
 0x12d   : > { %3096 = vst [vmem:[%s4201_s27 + $0x98] sm:$0xff] %v2595_v48  ;;  %v996_v11 = vpop.permute.xlu2 %995  ;;  %v946_v15 = vpop.permute.xlu1 %945 }
 0x12e   : > { %v2708_v0 = vadd.f32 %v4390_v24, %v946_v15  ;;  %v941_v27 = vpop.permute.xlu0 %940 }
 0x12f   : > { %v2705_v8 = vadd.f32 %v4371_v50, %v941_v27 }
 0x130   : > { %3141 = vst [vmem:[%s4201_s27 + $0x200] sm:$0xff] %v2708_v0  ;;  %v4584_v21 = vpop.f32.mrf.mxu2 }
 0x131   : > { %3140 = vst [vmem:[%s4201_s27 + $0x1f8] sm:$0xff] %v2705_v8  ;;  %v2732_v14 = vpop.f32.mrf.mxu1  ;;  %v524_v8 = vld [vmem:[%s4072_s21 + $0x388] sm:$0xff] }
 0x132   : > { %v2597_v26 = vpop.f32.mrf.mxu0  ;;  %v2733_v50 = vadd.f32 %v2732_v14, %v996_v11 }
 0x133   : > { %v2598_v24 = vadd.f32 %v2597_v26, %v4226_v41  ;;  %1175 = vperm.xlu2 %4022, %v521_v20   ;;  %1170 = vperm.xlu1 %4021, %v520_v43   ;;  %v4600_v27 = vpop.f32.mrf.mxu3  ;;  %v523_v20 = vld [vmem:[%s4072_s21 + $0x380] sm:$0xff] }
 0x134   : > { %1165 = vperm.xlu0 %4020, %v519_v5   ;;  %3838 = vmatmul.msk.bf16.gmra.mxu1 %vm2219_vm0, %v3946_v6  ;;  %3151 = vst [vmem:[%s4201_s27 + $0x250] sm:$0xff] %v2733_v50  ;;  %v522_v5 = vld [vmem:[%s4072_s21 + $0x378] sm:$0xff] }
 0x135   : > { %3097 = vst [vmem:[%s4201_s27 + $0xa0] sm:$0xff] %v2598_v24  ;;  %v4592_v48 = vpop.permute.xlu2 %1010  ;;  %v961_v15 = vpop.permute.xlu1 %960  ;;  %3811 = vmatmul.msk.bf16.gmra.mxu0 %vm2219_vm0, %v3919_v31  ;;  %3865 = vmatmul.msk.bf16.gmra.mxu2 %vm2219_vm0, %v3973_v38 }
 0x136   : > { %v2715_v41 = vadd.f32 %v4447_v42, %v961_v15  ;;  %v956_v11 = vpop.permute.xlu0 %955  ;;  %5311 = vst [vmem:[#allocation26_spill] sm:$0xff] %v4600_v27  ;;  %v3994_v42 = vld [vmem:[%s4077_s24 + $0x2e8] sm:$0xff] }
 0x137   : > { %v2713_v0 = vadd.f32 %v4428_v32, %v956_v11  ;;  %3886 = vmatmul.msk.bf16.gmra.mxu3 %vm2219_vm0, %v3994_v42  ;;  %v3974_v42 = vld [vmem:[%s4077_s24 + $0x248] sm:$0xff] }
 0x138   : > { %3144 = vst [vmem:[%s4201_s27 + $0x218] sm:$0xff] %v2715_v41  ;;  %v4606_v43 = vpop.f32.mrf.mxu2  ;;  %v526_v41 = vld [vmem:[%s4072_s21 + $0x398] sm:$0xff] }
 0x139   : > { %3143 = vst [vmem:[%s4201_s27 + $0x210] sm:$0xff] %v2713_v0  ;;  %v2734_v6 = vpop.f32.mrf.mxu1  ;;  %v525_v0 = vld [vmem:[%s4072_s21 + $0x390] sm:$0xff] }
 0x13a   : > { %v2599_v31 = vpop.f32.mrf.mxu0 }
 0x13b   : > { %v2600_v26 = vadd.f32 %v2599_v31, %v4305_v36  ;;  %1190 = vperm.xlu2 %4022, %v524_v8   ;;  %1185 = vperm.xlu1 %4021, %v523_v20   ;;  %v4617_v15 = vpop.f32.mrf.mxu3  ;;  %v527_v36 = vld [vmem:[%s4072_s21 + $0x3a0] sm:$0xff]  ;;  %v3920_v8 = vld [vmem:[%s4077_s24 + $0x98] sm:$0xff]  ;;  %v3947_v20 = vld [vmem:[%s4077_s24 + $0x170] sm:$0xff] }
 0x13c   : > { %1180 = vperm.xlu0 %4020, %v522_v5   ;;  %5312 = vst [vmem:[#allocation27_spill] sm:$0xff] %v4617_v15  ;;  %v3978_v15 = vld [vmem:[%s4077_s24 + $0x268] sm:$0xff] }
 0x13d   : > { %3098 = vst [vmem:[%s4201_s27 + $0xa8] sm:$0xff] %v2600_v26  ;;  %v4613_v32 = vpop.permute.xlu2 %1025  ;;  %v976_v14 = vpop.permute.xlu1 %975 }
 0x13e   : > { %v2723_v38 = vadd.f32 %v4510_v51, %v976_v14  ;;  %v971_v24 = vpop.permute.xlu0 %970 }
 0x13f   : > { %v2720_v50 = vadd.f32 %v4489_v22, %v971_v24 }
 0x140   : > { %3147 = vst [vmem:[%s4201_s27 + $0x230] sm:$0xff] %v2723_v38  ;;  %v4623_v11 = vpop.f32.mrf.mxu2 }
 0x141   : > { %3146 = vst [vmem:[%s4201_s27 + $0x228] sm:$0xff] %v2720_v50  ;;  %v2737_v31 = vpop.f32.mrf.mxu1  ;;  %v530_v50 = vld [vmem:[%s4072_s21 + $0x3b8] sm:$0xff] }
 0x142   : > { %v2602_v5 = vpop.f32.mrf.mxu0 }
 0x143   : > { %v2603_v51 = vadd.f32 %v2602_v5, %v4303_v34  ;;  %1205 = vperm.xlu2 %4022, %v527_v36   ;;  %1200 = vperm.xlu1 %4021, %v526_v41   ;;  %v4638_v24 = vpop.f32.mrf.mxu3  ;;  %v529_v36 = vld [vmem:[%s4072_s21 + $0x3b0] sm:$0xff] }
 0x144   : > { %1195 = vperm.xlu0 %4020, %v525_v0   ;;  %3839 = vmatmul.msk.bf16.gmra.mxu1 %vm2219_vm0, %v3947_v20  ;;  %5313 = vst [vmem:[#allocation28_spill] sm:$0xff] %v4638_v24  ;;  %v528_v0 = vld [vmem:[%s4072_s21 + $0x3a8] sm:$0xff]  ;;  %v539_v24 = vld [vmem:[%s4072_s21 + $0x400] sm:$0xff] }
 0x145   : > { %3099 = vst [vmem:[%s4201_s27 + $0xb0] sm:$0xff] %v2603_v51  ;;  %v4631_v22 = vpop.permute.xlu2 %1040  ;;  %v991_v26 = vpop.permute.xlu1 %990  ;;  %3812 = vmatmul.msk.bf16.gmra.mxu0 %vm2219_vm0, %v3920_v8  ;;  %3866 = vmatmul.msk.bf16.gmra.mxu2 %vm2219_vm0, %v3974_v42 }
 0x146   : > { %v2730_v14 = vadd.f32 %v4570_v2, %v991_v26  ;;  %v986_v38 = vpop.permute.xlu0 %985  ;;  %v3995_v2 = vld [vmem:[%s4077_s24 + $0x2f0] sm:$0xff] }
 0x147   : > { %v2728_v34 = vadd.f32 %v4550_v63, %v986_v38  ;;  %3887 = vmatmul.msk.bf16.gmra.mxu3 %vm2219_vm0, %v3995_v2 }
 0x148   : > { %3150 = vst [vmem:[%s4201_s27 + $0x248] sm:$0xff] %v2730_v14  ;;  %v4644_v41 = vpop.f32.mrf.mxu2 }
 0x149   : > { %3149 = vst [vmem:[%s4201_s27 + $0x240] sm:$0xff] %v2728_v34  ;;  %v2739_v20 = vpop.f32.mrf.mxu1  ;;  %v532_v34 = vld [vmem:[%s4072_s21 + $0x3c8] sm:$0xff] }
 0x14a   : > { %v2604_v8 = vpop.f32.mrf.mxu0  ;;  %v2740_v63 = vadd.f32 %v2739_v20, %v4592_v48  ;;  %v533_v48 = vld [vmem:[%s4072_s21 + $0x3d0] sm:$0xff] }
 0x14b   : > { %v2605_v5 = vadd.f32 %v2604_v8, %v4243_v54  ;;  %1220 = vperm.xlu2 %4022, %v530_v50   ;;  %1215 = vperm.xlu1 %4021, %v529_v36   ;;  %v4655_v38 = vpop.f32.mrf.mxu3  ;;  %v531_v36 = vld [vmem:[%s4072_s21 + $0x3c0] sm:$0xff]  ;;  %v3948_v8 = vld [vmem:[%s4077_s24 + $0x178] sm:$0xff] }
 0x14c   : > { %1210 = vperm.xlu0 %4020, %v528_v0   ;;  %3154 = vst [vmem:[%s4201_s27 + $0x268] sm:$0xff] %v2740_v63  ;;  %v3921_v0 = vld [vmem:[%s4077_s24 + $0xa0] sm:$0xff] }
 0x14d   : > { %3100 = vst [vmem:[%s4201_s27 + $0xb8] sm:$0xff] %v2605_v5  ;;  %v4652_v42 = vpop.permute.xlu2 %1055  ;;  %v1006_v51 = vpop.permute.xlu1 %1005  ;;  %v3975_v5 = vld [vmem:[%s4077_s24 + $0x250] sm:$0xff] }
 0x14e   : > { %v2738_v26 = vadd.f32 %v2737_v31, %v1006_v51  ;;  %v1001_v54 = vpop.permute.xlu0 %1000  ;;  %5314 = vst [vmem:[#allocation29_spill] sm:$0xff] %v4655_v38 }
 0x14f   : > { %v2735_v14 = vadd.f32 %v2734_v6, %v1001_v54 }
 0x150   : > { %3153 = vst [vmem:[%s4201_s27 + $0x260] sm:$0xff] %v2738_v26  ;;  %v4661_v50 = vpop.f32.mrf.mxu2 }
 0x151   : > { %3152 = vst [vmem:[%s4201_s27 + $0x258] sm:$0xff] %v2735_v14  ;;  %v2742_v2 = vpop.f32.mrf.mxu1  ;;  %v535_v14 = vld [vmem:[%s4072_s21 + $0x3e0] sm:$0xff] }
 0x152   : > { %v2607_v20 = vpop.f32.mrf.mxu0 }
 0x153   : > { %v2608_v6 = vadd.f32 %v2607_v20, %v4325_v58  ;;  %1235 = vperm.xlu2 %4022, %v533_v48   ;;  %1230 = vperm.xlu1 %4021, %v532_v34   ;;  %v4674_v54 = vpop.f32.mrf.mxu3  ;;  %v536_v58 = vld [vmem:[%s4072_s21 + $0x3e8] sm:$0xff]  ;;  %v534_v34 = vld [vmem:[%s4072_s21 + $0x3d8] sm:$0xff] }
 0x154   : > { %1225 = vperm.xlu0 %4020, %v531_v36   ;;  %3840 = vmatmul.msk.bf16.gmra.mxu1 %vm2219_vm0, %v3948_v8  ;;  %5315 = vst [vmem:[#allocation30_spill] sm:$0xff] %v4674_v54  ;;  %v3996_v20 = vld [vmem:[%s4077_s24 + $0x2f8] sm:$0xff] }
 0x155   : > { %3101 = vst [vmem:[%s4201_s27 + $0xc0] sm:$0xff] %v2608_v6  ;;  %v4669_v31 = vpop.permute.xlu2 %1070  ;;  %v1021_v63 = vpop.permute.xlu1 %1020  ;;  %3813 = vmatmul.msk.bf16.gmra.mxu0 %vm2219_vm0, %v3921_v0  ;;  %3867 = vmatmul.msk.bf16.gmra.mxu2 %vm2219_vm0, %v3975_v5 }
 0x156   : > { %v1016_v51 = vpop.permute.xlu0 %1015 }
 0x157   : > { %v2743_v26 = vadd.f32 %v2742_v2, %v1016_v51  ;;  %3888 = vmatmul.msk.bf16.gmra.mxu3 %vm2219_vm0, %v3996_v20  ;;  %v3976_v20 = vld [vmem:[%s4077_s24 + $0x258] sm:$0xff] }
 0x158   : > { %v4679_v48 = vpop.f32.mrf.mxu2 }
 0x159   : > { %3155 = vst [vmem:[%s4201_s27 + $0x270] sm:$0xff] %v2743_v26  ;;  %v2744_v0 = vpop.f32.mrf.mxu1 }
 0x15a   : > { %v2609_v36 = vpop.f32.mrf.mxu0  ;;  %v2745_v2 = vadd.f32 %v2744_v0, %v1021_v63  ;;  %v537_v63 = vld [vmem:[%s4072_s21 + $0x3f0] sm:$0xff] }
 0x15b   : > { %v2610_v8 = vadd.f32 %v2609_v36, %v4321_v53  ;;  %1250 = vperm.xlu2 %4022, %v536_v58   ;;  %1245 = vperm.xlu1 %4021, %v535_v14   ;;  %v4689_v26 = vpop.f32.mrf.mxu3  ;;  %v538_v53 = vld [vmem:[%s4072_s21 + $0x3f8] sm:$0xff]  ;;  %v3922_v58 = vld [vmem:[%s4077_s24 + $0xa8] sm:$0xff]  ;;  %v3949_v14 = vld [vmem:[%s4077_s24 + $0x180] sm:$0xff] }
 0x15c   : > { %1240 = vperm.xlu0 %4020, %v534_v34   ;;  %3156 = vst [vmem:[%s4201_s27 + $0x278] sm:$0xff] %v2745_v2 }
 0x15d   : > { %3102 = vst [vmem:[%s4201_s27 + $0xc8] sm:$0xff] %v2610_v8  ;;  %v4686_v5 = vpop.permute.xlu2 %1085  ;;  %v1036_v6 = vpop.permute.xlu1 %1035 }
 0x15e   : > { %v1031_v51 = vpop.permute.xlu0 %1030  ;;  %5316 = vst [vmem:[#allocation31_spill] sm:$0xff] %v4689_v26 }
 0x160   : > { %v4693_v36 = vpop.f32.mrf.mxu2 }
 0x161   : > { %v2747_v0 = vpop.f32.mrf.mxu1 }
 0x162   : > { %v2612_v34 = vpop.f32.mrf.mxu0  ;;  %v2748_v2 = vadd.f32 %v2747_v0, %v4613_v32  ;;  %v542_v32 = vld [vmem:[%s4072_s21 + $0x418] sm:$0xff]  ;;  %v3997_v0 = vld [vmem:[%s4077_s24 + $0x300] sm:$0xff] }
 0x163   : > { %v2613_v8 = vadd.f32 %v2612_v34, %v4263_v3  ;;  %1265 = vperm.xlu2 %4022, %v539_v24   ;;  %1260 = vperm.xlu1 %4021, %v538_v53   ;;  %v4712_v3 = vpop.f32.mrf.mxu3  ;;  %v541_v24 = vld [vmem:[%s4072_s21 + $0x410] sm:$0xff] }
 0x164   : > { %1255 = vperm.xlu0 %4020, %v537_v63   ;;  %3841 = vmatmul.msk.bf16.gmra.mxu1 %vm2219_vm0, %v3949_v14  ;;  %3157 = vst [vmem:[%s4201_s27 + $0x280] sm:$0xff] %v2748_v2  ;;  %v540_v63 = vld [vmem:[%s4072_s21 + $0x408] sm:$0xff] }
 0x165   : > { %3103 = vst [vmem:[%s4201_s27 + $0xd0] sm:$0xff] %v2613_v8  ;;  %v4702_v26 = vpop.permute.xlu2 %1100  ;;  %v4704_v38 = vpop.permute.xlu1 %1050  ;;  %3814 = vmatmul.msk.bf16.gmra.mxu0 %vm2219_vm0, %v3922_v58  ;;  %3868 = vmatmul.msk.bf16.gmra.mxu2 %vm2219_vm0, %v3976_v20 }
 0x166   : > { %v4709_v56 = vpop.permute.xlu0 %1045  ;;  %5317 = vst [vmem:[#allocation32_spill] sm:$0xff] %v4712_v3 }
 0x167   : > { %3889 = vmatmul.msk.bf16.gmra.mxu3 %vm2219_vm0, %v3997_v0 }
 0x168   : > { %v4716_v53 = vpop.f32.mrf.mxu2 }
 0x169   : > { %v2749_v58 = vpop.f32.mrf.mxu1 }
 0x16a   : > { %v2614_v34 = vpop.f32.mrf.mxu0  ;;  %v2750_v8 = vadd.f32 %v2749_v58, %v1031_v51  ;;  %v544_v51 = vld [vmem:[%s4072_s21 + $0x428] sm:$0xff] }
 0x16b   : > { %v2615_v14 = vadd.f32 %v2614_v34, %v4343_v13  ;;  %1280 = vperm.xlu2 %4022, %v542_v32   ;;  %1275 = vperm.xlu1 %4021, %v541_v24   ;;  %v4730_v27 = vpop.f32.mrf.mxu3  ;;  %v545_v13 = vld [vmem:[%s4072_s21 + $0x430] sm:$0xff]  ;;  %v543_v32 = vld [vmem:[%s4072_s21 + $0x420] sm:$0xff] }
 0x16c   : > { %1270 = vperm.xlu0 %4020, %v540_v63   ;;  %3158 = vst [vmem:[%s4201_s27 + $0x288] sm:$0xff] %v2750_v8  ;;  %v3923_v24 = vld [vmem:[%s4077_s24 + $0xb0] sm:$0xff]  ;;  %v3950_v63 = vld [vmem:[%s4077_s24 + $0x188] sm:$0xff] }
 0x16d   : > { %3104 = vst [vmem:[%s4201_s27 + $0xd8] sm:$0xff] %v2615_v14  ;;  %v4723_v20 = vpop.permute.xlu2 %1115  ;;  %v4725_v2 = vpop.permute.xlu1 %1065  ;;  %v3977_v14 = vld [vmem:[%s4077_s24 + $0x260] sm:$0xff] }
 0x16e   : > { %v4728_v3 = vpop.permute.xlu0 %1060  ;;  %5318 = vst [vmem:[#allocation33_spill] sm:$0xff] %v4730_v27 }
 0x170   : > { %v4734_v34 = vpop.f32.mrf.mxu2 }
 0x171   : > { %v2752_v0 = vpop.f32.mrf.mxu1 }
 0x172   : > { %v2617_v58 = vpop.f32.mrf.mxu0  ;;  %v2753_v29 = vadd.f32 %v2752_v0, %v1036_v6  ;;  %v548_v6 = vld [vmem:[%s4072_s21 + $0x448] sm:$0xff] }
 0x173   : > { %v2618_v8 = vadd.f32 %v2617_v58, %v4341_v12  ;;  %1295 = vperm.xlu2 %4022, %v545_v13   ;;  %1290 = vperm.xlu1 %4021, %v544_v51   ;;  %v4752_v12 = vpop.f32.mrf.mxu3  ;;  %v547_v13 = vld [vmem:[%s4072_s21 + $0x440] sm:$0xff]  ;;  %v3998_v0 = vld [vmem:[%s4077_s24 + $0x308] sm:$0xff] }
 0x174   : > { %1285 = vperm.xlu0 %4020, %v543_v32   ;;  %3842 = vmatmul.msk.bf16.gmra.mxu1 %vm2219_vm0, %v3950_v63  ;;  %3159 = vst [vmem:[%s4201_s27 + $0x290] sm:$0xff] %v2753_v29  ;;  %v546_v32 = vld [vmem:[%s4072_s21 + $0x438] sm:$0xff] }
 0x175   : > { %3105 = vst [vmem:[%s4201_s27 + $0xe0] sm:$0xff] %v2618_v8  ;;  %v4742_v18 = vpop.permute.xlu2 %1130  ;;  %v4744_v27 = vpop.permute.xlu1 %1080  ;;  %3815 = vmatmul.msk.bf16.gmra.mxu0 %vm2219_vm0, %v3923_v24  ;;  %3869 = vmatmul.msk.bf16.gmra.mxu2 %vm2219_vm0, %v3977_v14 }
 0x176   : > { %5319 = vst [vmem:[#allocation34_spill] sm:$0xff] %v4742_v18  ;;  %v4749_v54 = vpop.permute.xlu0 %1075  ;;  %v3979_v18 = vld [vmem:[%s4077_s24 + $0x270] sm:$0xff] }
 0x177   : > { %5320 = vst [vmem:[#allocation35_spill] sm:$0xff] %v4752_v12  ;;  %3890 = vmatmul.msk.bf16.gmra.mxu3 %vm2219_vm0, %v3998_v0 }
 0x178   : > { %v4756_v51 = vpop.f32.mrf.mxu2 }
 0x179   : > { %v2754_v24 = vpop.f32.mrf.mxu1 }
 0x17a   : > { %v2619_v58 = vpop.f32.mrf.mxu0  ;;  %v2755_v63 = vadd.f32 %v2754_v24, %v4631_v22  ;;  %v550_v22 = vld [vmem:[%s4072_s21 + $0x458] sm:$0xff] }
 0x17b   : > { %v2620_v29 = vadd.f32 %v2619_v58, %v4281_v19  ;;  %1310 = vperm.xlu2 %4022, %v548_v6   ;;  %1305 = vperm.xlu1 %4021, %v547_v13   ;;  %v4771_v19 = vpop.f32.mrf.mxu3  ;;  %v551_v58 = vld [vmem:[%s4072_s21 + $0x460] sm:$0xff]  ;;  %v549_v6 = vld [vmem:[%s4072_s21 + $0x450] sm:$0xff]  ;;  %v3924_v13 = vld [vmem:[%s4077_s24 + $0xb8] sm:$0xff] }
 0x17c   : > { %1300 = vperm.xlu0 %4020, %v546_v32   ;;  %3160 = vst [vmem:[%s4201_s27 + $0x298] sm:$0xff] %v2755_v63  ;;  %v3951_v32 = vld [vmem:[%s4077_s24 + $0x190] sm:$0xff] }
 0x17d   : > { %3106 = vst [vmem:[%s4201_s27 + $0xe8] sm:$0xff] %v2620_v29  ;;  %v4764_v14 = vpop.permute.xlu2 %1145  ;;  %v4766_v8 = vpop.permute.xlu1 %1095 }
 0x17e   : > { %5321 = vst [vmem:[#allocation36_spill] sm:$0xff] %v4764_v14  ;;  %v4769_v12 = vpop.permute.xlu0 %1090 }
 0x17f   : > { %5322 = vst [vmem:[#allocation37_spill] sm:$0xff] %v4771_v19 }
 0x180   : > { %v4775_v24 = vpop.f32.mrf.mxu2 }
 0x181   : > { %v2757_v29 = vpop.f32.mrf.mxu1 }
 0x182   : > { %v2622_v0 = vpop.f32.mrf.mxu0  ;;  %v2758_v30 = vadd.f32 %v2757_v29, %v4709_v56  ;;  %v554_v56 = vld [vmem:[%s4072_s21 + $0x478] sm:$0xff] }
 0x183   : > { %v2623_v63 = vadd.f32 %v2622_v0, %v4363_v44  ;;  %1325 = vperm.xlu2 %4022, %v551_v58   ;;  %1320 = vperm.xlu1 %4021, %v550_v22   ;;  %v4794_v44 = vpop.f32.mrf.mxu3  ;;  %v553_v58 = vld [vmem:[%s4072_s21 + $0x470] sm:$0xff] }
 0x184   : > { %1315 = vperm.xlu0 %4020, %v549_v6   ;;  %3843 = vmatmul.msk.bf16.gmra.mxu1 %vm2219_vm0, %v3951_v32  ;;  %3161 = vst [vmem:[%s4201_s27 + $0x2a0] sm:$0xff] %v2758_v30  ;;  %v552_v6 = vld [vmem:[%s4072_s21 + $0x468] sm:$0xff] }
 0x185   : > { %3107 = vst [vmem:[%s4201_s27 + $0xf0] sm:$0xff] %v2623_v63  ;;  %v4784_v19 = vpop.permute.xlu2 %1160  ;;  %v4786_v14 = vpop.permute.xlu1 %1110  ;;  %3816 = vmatmul.msk.bf16.gmra.mxu0 %vm2219_vm0, %v3924_v13  ;;  %3870 = vmatmul.msk.bf16.gmra.mxu2 %vm2219_vm0, %v3978_v15  ;;  %v3999_v13 = vld [vmem:[%s4077_s24 + $0x310] sm:$0xff] }
 0x186   : > { %5323 = vst [vmem:[#allocation38_spill] sm:$0xff] %v4784_v19  ;;  %v4791_v49 = vpop.permute.xlu0 %1105 }
 0x187   : > { %5324 = vst [vmem:[#allocation39_spill] sm:$0xff] %v4794_v44  ;;  %3891 = vmatmul.msk.bf16.gmra.mxu3 %vm2219_vm0, %v3999_v13 }
 0x188   : > { %v4798_v22 = vpop.f32.mrf.mxu2 }
 0x189   : > { %v2759_v29 = vpop.f32.mrf.mxu1 }
 0x18a   : > { %v2624_v0 = vpop.f32.mrf.mxu0  ;;  %v2760_v32 = vadd.f32 %v2759_v29, %v4704_v38  ;;  %v557_v38 = vld [vmem:[%s4072_s21 + $0x490] sm:$0xff]  ;;  %v3952_v29 = vld [vmem:[%s4077_s24 + $0x198] sm:$0xff] }
 0x18b   : > { %v2625_v30 = vadd.f32 %v2624_v0, %v4359_v39  ;;  %1340 = vperm.xlu2 %4022, %v554_v56   ;;  %1335 = vperm.xlu1 %4021, %v553_v58   ;;  %v4812_v39 = vpop.f32.mrf.mxu3  ;;  %v556_v56 = vld [vmem:[%s4072_s21 + $0x488] sm:$0xff]  ;;  %v3925_v0 = vld [vmem:[%s4077_s24 + $0xc0] sm:$0xff] }
 0x18c   : > { %1330 = vperm.xlu0 %4020, %v552_v6   ;;  %3162 = vst [vmem:[%s4201_s27 + $0x2a8] sm:$0xff] %v2760_v32  ;;  %v555_v6 = vld [vmem:[%s4072_s21 + $0x480] sm:$0xff] }
 0x18d   : > { %3108 = vst [vmem:[%s4201_s27 + $0xf8] sm:$0xff] %v2625_v30  ;;  %v1176_v15 = vpop.permute.xlu2 %1175  ;;  %v4806_v63 = vpop.permute.xlu1 %1125 }
 0x18e   : > { %v2823_v44 = vadd.f32 %v4254_v60, %v1176_v15  ;;  %v4810_v19 = vpop.permute.xlu0 %1120  ;;  %5325 = vst [vmem:[#allocation40_spill] sm:$0xff] %v4812_v39 }
 0x190   : > { %3187 = vst [vmem:[%s4201_s27 + $0x370] sm:$0xff] %v2823_v44  ;;  %v4817_v58 = vpop.f32.mrf.mxu2 }
 0x191   : > { %v2762_v30 = vpop.f32.mrf.mxu1 }
 0x192   : > { %v2627_v13 = vpop.f32.mrf.mxu0  ;;  %v2763_v32 = vadd.f32 %v2762_v30, %v4652_v42  ;;  %v558_v30 = vld [vmem:[%s4072_s21 + $0x498] sm:$0xff] }
 0x193   : > { %v2628_v60 = vadd.f32 %v2627_v13, %v4301_v33  ;;  %1355 = vperm.xlu2 %4022, %v557_v38   ;;  %1350 = vperm.xlu1 %4021, %v556_v56   ;;  %v4835_v42 = vpop.f32.mrf.mxu3  ;;  %v560_v38 = vld [vmem:[%s4072_s21 + $0x4a8] sm:$0xff]  ;;  %v559_v56 = vld [vmem:[%s4072_s21 + $0x4a0] sm:$0xff] }
 0x194   : > { %1345 = vperm.xlu0 %4020, %v555_v6   ;;  %3844 = vmatmul.msk.bf16.gmra.mxu1 %vm2219_vm0, %v3952_v29  ;;  %3163 = vst [vmem:[%s4201_s27 + $0x2b0] sm:$0xff] %v2763_v32 }
 0x195   : > { %3109 = vst [vmem:[%s4201_s27 + $0x100] sm:$0xff] %v2628_v60  ;;  %v1191_v44 = vpop.permute.xlu2 %1190  ;;  %v4826_v15 = vpop.permute.xlu1 %1140  ;;  %3817 = vmatmul.msk.bf16.gmra.mxu0 %vm2219_vm0, %v3925_v0  ;;  %3871 = vmatmul.msk.bf16.gmra.mxu2 %vm2219_vm0, %v3979_v18  ;;  %v4000_v60 = vld [vmem:[%s4077_s24 + $0x318] sm:$0xff] }
 0x196   : > { %v2830_v33 = vadd.f32 %v4309_v40, %v1191_v44  ;;  %v4832_v13 = vpop.permute.xlu0 %1135  ;;  %5326 = vst [vmem:[#allocation41_spill] sm:$0xff] %v4835_v42  ;;  %v3980_v42 = vld [vmem:[%s4077_s24 + $0x278] sm:$0xff] }
 0x197   : > { %3892 = vmatmul.msk.bf16.gmra.mxu3 %vm2219_vm0, %v4000_v60 }
 0x198   : > { %3190 = vst [vmem:[%s4201_s27 + $0x388] sm:$0xff] %v2830_v33  ;;  %v4840_v6 = vpop.f32.mrf.mxu2 }
 0x199   : > { %v2764_v29 = vpop.f32.mrf.mxu1 }
 0x19a   : > { %v2629_v0 = vpop.f32.mrf.mxu0  ;;  %v2765_v18 = vadd.f32 %v2764_v29, %v4728_v3  ;;  %v563_v3 = vld [vmem:[%s4072_s21 + $0x4c0] sm:$0xff] }
 0x19b   : > { %v2630_v40 = vadd.f32 %v2629_v0, %v4381_v7  ;;  %1370 = vperm.xlu2 %4022, %v560_v38   ;;  %1365 = vperm.xlu1 %4021, %v559_v56   ;;  %v4854_v7 = vpop.f32.mrf.mxu3  ;;  %v562_v38 = vld [vmem:[%s4072_s21 + $0x4b8] sm:$0xff]  ;;  %v3926_v0 = vld [vmem:[%s4077_s24 + $0xc8] sm:$0xff]  ;;  %v3953_v29 = vld [vmem:[%s4077_s24 + $0x1a0] sm:$0xff] }
 0x19c   : > { %1360 = vperm.xlu0 %4020, %v558_v30   ;;  %3164 = vst [vmem:[%s4201_s27 + $0x2b8] sm:$0xff] %v2765_v18  ;;  %v561_v30 = vld [vmem:[%s4072_s21 + $0x4b0] sm:$0xff] }
 0x19d   : > { %3110 = vst [vmem:[%s4201_s27 + $0x108] sm:$0xff] %v2630_v40  ;;  %v1206_v32 = vpop.permute.xlu2 %1205  ;;  %v4848_v44 = vpop.permute.xlu1 %1155 }
 0x19e   : > { %v2838_v33 = vadd.f32 %v4368_v45, %v1206_v32  ;;  %v4852_v39 = vpop.permute.xlu0 %1150 }
 0x1a0   : > { %3193 = vst [vmem:[%s4201_s27 + $0x3a0] sm:$0xff] %v2838_v33  ;;  %v4859_v56 = vpop.f32.mrf.mxu2 }
 0x1a1   : > { %v2767_v40 = vpop.f32.mrf.mxu1 }
 0x1a2   : > { %v2632_v60 = vpop.f32.mrf.mxu0  ;;  %v2768_v45 = vadd.f32 %v2767_v40, %v4725_v2  ;;  %v565_v40 = vld [vmem:[%s4072_s21 + $0x4d0] sm:$0xff] }
 0x1a3   : > { %v2633_v18 = vadd.f32 %v2632_v60, %v4379_v1  ;;  %1385 = vperm.xlu2 %4022, %v563_v3   ;;  %1380 = vperm.xlu1 %4021, %v562_v38   ;;  %v566_v60 = vld [vmem:[%s4072_s21 + $0x4d8] sm:$0xff] }
 0x1a4   : > { %1375 = vperm.xlu0 %4020, %v561_v30   ;;  %3845 = vmatmul.msk.bf16.gmra.mxu1 %vm2219_vm0, %v3953_v29  ;;  %3165 = vst [vmem:[%s4201_s27 + $0x2c0] sm:$0xff] %v2768_v45  ;;  %v4875_v30 = vpop.f32.mrf.mxu3  ;;  %v564_v29 = vld [vmem:[%s4072_s21 + $0x4c8] sm:$0xff] }
 0x1a5   : > { %3111 = vst [vmem:[%s4201_s27 + $0x110] sm:$0xff] %v2633_v18  ;;  %v1221_v32 = vpop.permute.xlu2 %1220  ;;  %v1171_v33 = vpop.permute.xlu1 %1170  ;;  %3818 = vmatmul.msk.bf16.gmra.mxu0 %vm2219_vm0, %v3926_v0  ;;  %3872 = vmatmul.msk.bf16.gmra.mxu2 %vm2219_vm0, %v3980_v42 }
 0x1a6   : > { %v2845_v1 = vadd.f32 %v4423_v62, %v1221_v32  ;;  %v2820_v2 = vadd.f32 %v4234_v46, %v1171_v33  ;;  %v1166_v3 = vpop.permute.xlu0 %1165  ;;  %v4001_v46 = vld [vmem:[%s4077_s24 + $0x320] sm:$0xff] }
 0x1a7   : > { %v2818_v38 = vadd.f32 %v4218_v35, %v1166_v3  ;;  %3893 = vmatmul.msk.bf16.gmra.mxu3 %vm2219_vm0, %v4001_v46  ;;  %v569_v3 = vld [vmem:[%s4072_s21 + $0x4f0] sm:$0xff] }
 0x1a8   : > { %3196 = vst [vmem:[%s4201_s27 + $0x3b8] sm:$0xff] %v2845_v1  ;;  %v4881_v0 = vpop.f32.mrf.mxu2 }
 0x1a9   : > { %3186 = vst [vmem:[%s4201_s27 + $0x368] sm:$0xff] %v2820_v2  ;;  %v2769_v18 = vpop.f32.mrf.mxu1 }
 0x1aa   : > { %3185 = vst [vmem:[%s4201_s27 + $0x360] sm:$0xff] %v2818_v38  ;;  %v2634_v62 = vpop.f32.mrf.mxu0  ;;  %v2770_v35 = vadd.f32 %v2769_v18, %v4669_v31  ;;  %v568_v38 = vld [vmem:[%s4072_s21 + $0x4e8] sm:$0xff] }
 0x1ab   : > { %v2635_v42 = vadd.f32 %v2634_v62, %v4319_v52  ;;  %1400 = vperm.xlu2 %4022, %v566_v60   ;;  %1395 = vperm.xlu1 %4021, %v565_v40   ;;  %v567_v40 = vld [vmem:[%s4072_s21 + $0x4e0] sm:$0xff]  ;;  %v3954_v62 = vld [vmem:[%s4077_s24 + $0x1a8] sm:$0xff] }
 0x1ac   : > { %1390 = vperm.xlu0 %4020, %v564_v29   ;;  %3166 = vst [vmem:[%s4201_s27 + $0x2c8] sm:$0xff] %v2770_v35  ;;  %v4894_v2 = vpop.f32.mrf.mxu3  ;;  %v3927_v29 = vld [vmem:[%s4077_s24 + $0xd0] sm:$0xff] }
 0x1ad   : > { %3112 = vst [vmem:[%s4201_s27 + $0x118] sm:$0xff] %v2635_v42  ;;  %v1236_v45 = vpop.permute.xlu2 %1235  ;;  %v1186_v32 = vpop.permute.xlu1 %1185 }
 0x1ae   : > { %v2853_v52 = vadd.f32 %v4486_v28, %v1236_v45  ;;  %v2828_v31 = vadd.f32 %v4292_v23, %v1186_v32  ;;  %v1181_v33 = vpop.permute.xlu0 %1180  ;;  %v3981_v23 = vld [vmem:[%s4077_s24 + $0x280] sm:$0xff] }
 0x1af   : > { %v2825_v1 = vadd.f32 %v4271_v9, %v1181_v33  ;;  %v571_v33 = vld [vmem:[%s4072_s21 + $0x500] sm:$0xff] }
 0x1b0   : > { %3199 = vst [vmem:[%s4201_s27 + $0x3d0] sm:$0xff] %v2853_v52  ;;  %v4900_v60 = vpop.f32.mrf.mxu2 }
 0x1b1   : > { %3189 = vst [vmem:[%s4201_s27 + $0x380] sm:$0xff] %v2828_v31  ;;  %v2772_v18 = vpop.f32.mrf.mxu1  ;;  %v572_v31 = vld [vmem:[%s4072_s21 + $0x508] sm:$0xff] }
 0x1b2   : > { %3188 = vst [vmem:[%s4201_s27 + $0x378] sm:$0xff] %v2825_v1  ;;  %v2637_v28 = vpop.f32.mrf.mxu0  ;;  %v2773_v9 = vadd.f32 %v2772_v18, %v4749_v54 }
 0x1b3   : > { %v2638_v46 = vadd.f32 %v2637_v28, %v4401_v47  ;;  %1415 = vperm.xlu2 %4022, %v569_v3   ;;  %1410 = vperm.xlu1 %4021, %v568_v38   ;;  %v570_v3 = vld [vmem:[%s4072_s21 + $0x4f8] sm:$0xff] }
 0x1b4   : > { %1405 = vperm.xlu0 %4020, %v567_v40   ;;  %3846 = vmatmul.msk.bf16.gmra.mxu1 %vm2219_vm0, %v3954_v62  ;;  %3167 = vst [vmem:[%s4201_s27 + $0x2d0] sm:$0xff] %v2773_v9  ;;  %v4917_v52 = vpop.f32.mrf.mxu3  ;;  %v574_v9 = vld [vmem:[%s4072_s21 + $0x518] sm:$0xff] }
 0x1b5   : > { %3113 = vst [vmem:[%s4201_s27 + $0x120] sm:$0xff] %v2638_v46  ;;  %v1251_v42 = vpop.permute.xlu2 %1250  ;;  %v1201_v35 = vpop.permute.xlu1 %1200  ;;  %3819 = vmatmul.msk.bf16.gmra.mxu0 %vm2219_vm0, %v3927_v29  ;;  %3873 = vmatmul.msk.bf16.gmra.mxu2 %vm2219_vm0, %v3981_v23  ;;  %v575_v46 = vld [vmem:[%s4072_s21 + $0x520] sm:$0xff] }
 0x1b6   : > { %v2860_v47 = vadd.f32 %v4544_v55, %v1251_v42  ;;  %v2835_v54 = vadd.f32 %v4347_v17, %v1201_v35  ;;  %v1196_v45 = vpop.permute.xlu0 %1195  ;;  %v4002_v17 = vld [vmem:[%s4077_s24 + $0x328] sm:$0xff]  ;;  %v573_v35 = vld [vmem:[%s4072_s21 + $0x510] sm:$0xff] }
 0x1b7   : > { %v2833_v32 = vadd.f32 %v4330_v61, %v1196_v45  ;;  %3894 = vmatmul.msk.bf16.gmra.mxu3 %vm2219_vm0, %v4002_v17  ;;  %v577_v17 = vld [vmem:[%s4072_s21 + $0x530] sm:$0xff] }
 0x1b8   : > { %3202 = vst [vmem:[%s4201_s27 + $0x3e8] sm:$0xff] %v2860_v47  ;;  %v4923_v1 = vpop.f32.mrf.mxu2 }
 0x1b9   : > { %3192 = vst [vmem:[%s4201_s27 + $0x398] sm:$0xff] %v2835_v54  ;;  %v2774_v38 = vpop.f32.mrf.mxu1 }
 0x1ba   : > { %3191 = vst [vmem:[%s4201_s27 + $0x390] sm:$0xff] %v2833_v32  ;;  %v2639_v55 = vpop.f32.mrf.mxu0  ;;  %v2775_v61 = vadd.f32 %v2774_v38, %v4744_v27 }
 0x1bb   : > { %v2640_v40 = vadd.f32 %v2639_v55, %v4397_v4  ;;  %1430 = vperm.xlu2 %4022, %v572_v31   ;;  %1425 = vperm.xlu1 %4021, %v571_v33   ;;  %v5327_v31 = vld [vmem:[#allocation15_spill] sm:$0xff] }
 0x1bc   : > { %1420 = vperm.xlu0 %4020, %v570_v3   ;;  %3168 = vst [vmem:[%s4201_s27 + $0x2d8] sm:$0xff] %v2775_v61  ;;  %v4936_v23 = vpop.f32.mrf.mxu3  ;;  %v576_v61 = vld [vmem:[%s4072_s21 + $0x528] sm:$0xff] }
 0x1bd   : > { %3114 = vst [vmem:[%s4201_s27 + $0x128] sm:$0xff] %v2640_v40  ;;  %v1266_v29 = vpop.permute.xlu2 %1265  ;;  %v1216_v62 = vpop.permute.xlu1 %1215 }
 0x1be   : > { %v2868_v28 = vadd.f32 %v4606_v43, %v1266_v29  ;;  %v2843_v4 = vadd.f32 %v4406_v59, %v1216_v62  ;;  %v1211_v18 = vpop.permute.xlu0 %1210 }
 0x1bf   : > { %v2840_v27 = vadd.f32 %v4385_v16, %v1211_v18 }
 0x1c0   : > { %3205 = vst [vmem:[%s4201_s27 + $0x400] sm:$0xff] %v2868_v28  ;;  %v4942_v42 = vpop.f32.mrf.mxu2  ;;  %v5329_v28 = vld [vmem:[#allocation7_spill] sm:$0xff] }
 0x1c1   : > { %3195 = vst [vmem:[%s4201_s27 + $0x3b0] sm:$0xff] %v2843_v4  ;;  %v2777_v43 = vpop.f32.mrf.mxu1 }
 0x1c2   : > { %3194 = vst [vmem:[%s4201_s27 + $0x3a8] sm:$0xff] %v2840_v27  ;;  %v2642_v47 = vpop.f32.mrf.mxu0  ;;  %v2778_v16 = vadd.f32 %v2777_v43, %v4686_v5  ;;  %v578_v5 = vld [vmem:[%s4072_s21 + $0x538] sm:$0xff] }
 0x1c3   : > { %v2643_v59 = vadd.f32 %v2642_v47, %v4339_v10  ;;  %1445 = vperm.xlu2 %4022, %v575_v46   ;;  %1440 = vperm.xlu1 %4021, %v574_v9   ;;  %v5328_v10 = vld [vmem:[#allocation11_spill] sm:$0xff] }
 0x1c4   : > { %1435 = vperm.xlu0 %4020, %v573_v35   ;;  %3169 = vst [vmem:[%s4201_s27 + $0x2e0] sm:$0xff] %v2778_v16  ;;  %v4953_v38 = vpop.f32.mrf.mxu3  ;;  %v580_v16 = vld [vmem:[%s4072_s21 + $0x548] sm:$0xff] }
 0x1c5   : > { %3115 = vst [vmem:[%s4201_s27 + $0x130] sm:$0xff] %v2643_v59  ;;  %v1281_v54 = vpop.permute.xlu2 %1280  ;;  %v1231_v45 = vpop.permute.xlu1 %1230  ;;  %v581_v59 = vld [vmem:[%s4072_s21 + $0x550] sm:$0xff] }
 0x1c6   : > { %v2875_v32 = vadd.f32 %v4661_v50, %v1281_v54  ;;  %v2850_v33 = vadd.f32 %v5327_v31, %v1231_v45  ;;  %v1226_v3 = vpop.permute.xlu0 %1225  ;;  %v4003_v50 = vld [vmem:[%s4077_s24 + $0x330] sm:$0xff]  ;;  %v579_v45 = vld [vmem:[%s4072_s21 + $0x540] sm:$0xff] }
 0x1c7   : > { %v2848_v55 = vadd.f32 %v5328_v10, %v1226_v3  ;;  %3895 = vmatmul.msk.bf16.gmra.mxu3 %vm2219_vm0, %v4003_v50  ;;  %v5330_v31 = vld [vmem:[#allocation6_spill] sm:$0xff]  ;;  %v582_v50 = vld [vmem:[%s4072_s21 + $0x558] sm:$0xff] }
 0x1c8   : > { %3208 = vst [vmem:[%s4201_s27 + $0x418] sm:$0xff] %v2875_v32  ;;  %v4959_v40 = vpop.f32.mrf.mxu2 }
 0x1c9   : > { %3198 = vst [vmem:[%s4201_s27 + $0x3c8] sm:$0xff] %v2850_v33  ;;  %v2779_v62 = vpop.f32.mrf.mxu1 }
 0x1ca   : > { %3197 = vst [vmem:[%s4201_s27 + $0x3c0] sm:$0xff] %v2848_v55  ;;  %v2644_v29 = vpop.f32.mrf.mxu0  ;;  %v2780_v18 = vadd.f32 %v2779_v62, %v4769_v12 }
 0x1cb   : > { %v2645_v4 = vadd.f32 %v2644_v29, %v5329_v28  ;;  %1460 = vperm.xlu2 %4022, %v578_v5   ;;  %1455 = vperm.xlu1 %4021, %v577_v17   ;;  %v583_v29 = vld [vmem:[%s4072_s21 + $0x560] sm:$0xff] }
 0x1cc   : > { %1450 = vperm.xlu0 %4020, %v576_v61   ;;  %3170 = vst [vmem:[%s4201_s27 + $0x2e8] sm:$0xff] %v2780_v18  ;;  %v4972_v43 = vpop.f32.mrf.mxu3  ;;  %v5331_v18 = vld [vmem:[#allocation2_spill] sm:$0xff] }
 0x1cd   : > { %3116 = vst [vmem:[%s4201_s27 + $0x138] sm:$0xff] %v2645_v4  ;;  %v1296_v27 = vpop.permute.xlu2 %1295  ;;  %v1246_v46 = vpop.permute.xlu1 %1245 }
 0x1ce   : > { %v2883_v9 = vadd.f32 %v4716_v53, %v1296_v27  ;;  %v2858_v35 = vadd.f32 %v4527_v57, %v1246_v46  ;;  %v1241_v47 = vpop.permute.xlu0 %1240 }
 0x1cf   : > { %v2855_v12 = vadd.f32 %v4505_v37, %v1241_v47 }
 0x1d0   : > { %3211 = vst [vmem:[%s4201_s27 + $0x430] sm:$0xff] %v2883_v9  ;;  %v4978_v54 = vpop.f32.mrf.mxu2 }
 0x1d1   : > { %3201 = vst [vmem:[%s4201_s27 + $0x3e0] sm:$0xff] %v2858_v35  ;;  %v2782_v53 = vpop.f32.mrf.mxu1 }
 0x1d2   : > { %3200 = vst [vmem:[%s4201_s27 + $0x3d8] sm:$0xff] %v2855_v12  ;;  %v2647_v32 = vpop.f32.mrf.mxu0  ;;  %v2783_v37 = vadd.f32 %v2782_v53, %v4766_v8  ;;  %v584_v8 = vld [vmem:[%s4072_s21 + $0x568] sm:$0xff] }
 0x1d3   : > { %v2648_v57 = vadd.f32 %v2647_v32, %v5330_v31  ;;  %1475 = vperm.xlu2 %4022, %v581_v59   ;;  %1470 = vperm.xlu1 %4021, %v580_v16   ;;  %v587_v59 = vld [vmem:[%s4072_s21 + $0x580] sm:$0xff]  ;;  %v586_v16 = vld [vmem:[%s4072_s21 + $0x578] sm:$0xff]  ;;  %v585_v32 = vld [vmem:[%s4072_s21 + $0x570] sm:$0xff] }
 0x1d4   : > { %1465 = vperm.xlu0 %4020, %v579_v45   ;;  %3171 = vst [vmem:[%s4201_s27 + $0x2f0] sm:$0xff] %v2783_v37  ;;  %v4989_v61 = vpop.f32.mrf.mxu3 }
 0x1d5   : > { %3117 = vst [vmem:[%s4201_s27 + $0x140] sm:$0xff] %v2648_v57  ;;  %v1311_v33 = vpop.permute.xlu2 %1310  ;;  %v1261_v3 = vpop.permute.xlu1 %1260 }
 0x1d6   : > { %v2890_v10 = vadd.f32 %v4775_v24, %v1311_v33  ;;  %v2865_v55 = vadd.f32 %v4584_v21, %v1261_v3  ;;  %v1256_v5 = vpop.permute.xlu0 %1255  ;;  %v4004_v24 = vld [vmem:[%s4077_s24 + $0x338] sm:$0xff] }
 0x1d7   : > { %v2863_v17 = vadd.f32 %v4566_v25, %v1256_v5  ;;  %3896 = vmatmul.msk.bf16.gmra.mxu3 %vm2219_vm0, %v4004_v24 }
 0x1d8   : > { %3214 = vst [vmem:[%s4201_s27 + $0x448] sm:$0xff] %v2890_v10  ;;  %v4995_v62 = vpop.f32.mrf.mxu2 }
 0x1d9   : > { %3204 = vst [vmem:[%s4201_s27 + $0x3f8] sm:$0xff] %v2865_v55  ;;  %v2784_v4 = vpop.f32.mrf.mxu1 }
 0x1da   : > { %3203 = vst [vmem:[%s4201_s27 + $0x3f0] sm:$0xff] %v2863_v17  ;;  %v2649_v28 = vpop.f32.mrf.mxu0  ;;  %v2785_v25 = vadd.f32 %v2784_v4, %v4702_v26  ;;  %v589_v17 = vld [vmem:[%s4072_s21 + $0x590] sm:$0xff]  ;;  %v5333_v4 = vld [vmem:[#allocation9_spill] sm:$0xff] }
 0x1db   : > { %v2650_v21 = vadd.f32 %v2649_v28, %v5331_v18  ;;  %1490 = vperm.xlu2 %4022, %v584_v8   ;;  %1485 = vperm.xlu1 %4021, %v583_v29   ;;  %v588_v29 = vld [vmem:[%s4072_s21 + $0x588] sm:$0xff] }
 0x1dc   : > { %1480 = vperm.xlu0 %4020, %v582_v50   ;;  %3172 = vst [vmem:[%s4201_s27 + $0x2f8] sm:$0xff] %v2785_v25  ;;  %v5008_v12 = vpop.f32.mrf.mxu3 }
 0x1dd   : > { %3118 = vst [vmem:[%s4201_s27 + $0x148] sm:$0xff] %v2650_v21  ;;  %v1326_v27 = vpop.permute.xlu2 %1325  ;;  %v1276_v46 = vpop.permute.xlu1 %1275 }
 0x1de   : > { %v2898_v9 = vadd.f32 %v4840_v6, %v1326_v27  ;;  %v2873_v35 = vadd.f32 %v4644_v41, %v1276_v46  ;;  %v1271_v47 = vpop.permute.xlu0 %1270  ;;  %v5332_v6 = vld [vmem:[#allocation10_spill] sm:$0xff] }
 0x1df   : > { %v2870_v26 = vadd.f32 %v4623_v11, %v1271_v47 }
 0x1e0   : > { %3217 = vst [vmem:[%s4201_s27 + $0x460] sm:$0xff] %v2898_v9  ;;  %v2919_v45 = vpop.f32.mrf.mxu2  ;;  %v593_v9 = vld [vmem:[%s4072_s21 + $0x5b0] sm:$0xff] }
 0x1e1   : > { %3207 = vst [vmem:[%s4201_s27 + $0x410] sm:$0xff] %v2873_v35  ;;  %v2787_v31 = vpop.f32.mrf.mxu1  ;;  %v592_v35 = vld [vmem:[%s4072_s21 + $0x5a8] sm:$0xff] }
 0x1e2   : > { %3206 = vst [vmem:[%s4201_s27 + $0x408] sm:$0xff] %v2870_v26  ;;  %v2652_v53 = vpop.f32.mrf.mxu0  ;;  %v2788_v11 = vadd.f32 %v2787_v31, %v4791_v49  ;;  %v590_v49 = vld [vmem:[%s4072_s21 + $0x598] sm:$0xff]  ;;  %v591_v26 = vld [vmem:[%s4072_s21 + $0x5a0] sm:$0xff] }
 0x1e3   : > { %v2653_v41 = vadd.f32 %v2652_v53, %v5332_v6  ;;  %1505 = vperm.xlu2 %4022, %v587_v59   ;;  %1500 = vperm.xlu1 %4021, %v586_v16   ;;  %v5334_v16 = vld [vmem:[#allocation3_spill] sm:$0xff] }
 0x1e4   : > { %1495 = vperm.xlu0 %4020, %v585_v32   ;;  %3173 = vst [vmem:[%s4201_s27 + $0x300] sm:$0xff] %v2788_v11  ;;  %v5023_v5 = vpop.f32.mrf.mxu3 }
 0x1e5   : > { %3119 = vst [vmem:[%s4201_s27 + $0x150] sm:$0xff] %v2653_v41  ;;  %v1341_v57 = vpop.permute.xlu2 %1340  ;;  %v1291_v37 = vpop.permute.xlu1 %1290 }
 0x1e6   : > { %v2905_v33 = vadd.f32 %v4900_v60, %v1341_v57  ;;  %v2880_v3 = vadd.f32 %v4693_v36, %v1291_v37  ;;  %v1286_v10 = vpop.permute.xlu0 %1285  ;;  %v4005_v60 = vld [vmem:[%s4077_s24 + $0x340] sm:$0xff] }
 0x1e7   : > { %v2878_v55 = vadd.f32 %v4679_v48, %v1286_v10  ;;  %3897 = vmatmul.msk.bf16.gmra.mxu3 %vm2219_vm0, %v4005_v60  ;;  %v595_v37 = vld [vmem:[%s4072_s21 + $0x5c0] sm:$0xff] }
 0x1e8   : > { %3220 = vst [vmem:[%s4201_s27 + $0x478] sm:$0xff] %v2905_v33  ;;  %v5029_v8 = vpop.f32.mrf.mxu2 }
 0x1e9   : > { %3210 = vst [vmem:[%s4201_s27 + $0x428] sm:$0xff] %v2880_v3  ;;  %v2789_v28 = vpop.f32.mrf.mxu1  ;;  %v594_v3 = vld [vmem:[%s4072_s21 + $0x5b8] sm:$0xff] }
 0x1ea   : > { %3209 = vst [vmem:[%s4201_s27 + $0x420] sm:$0xff] %v2878_v55  ;;  %v2654_v50 = vpop.f32.mrf.mxu0  ;;  %v2790_v48 = vadd.f32 %v2789_v28, %v4786_v14 }
 0x1eb   : > { %v2655_v36 = vadd.f32 %v2654_v50, %v5333_v4  ;;  %1520 = vperm.xlu2 %4022, %v590_v49   ;;  %1515 = vperm.xlu1 %4021, %v589_v17  }
 0x1ec   : > { %1510 = vperm.xlu0 %4020, %v588_v29   ;;  %3174 = vst [vmem:[%s4201_s27 + $0x308] sm:$0xff] %v2790_v48  ;;  %v5042_v46 = vpop.f32.mrf.mxu3 }
 0x1ed   : > { %3120 = vst [vmem:[%s4201_s27 + $0x158] sm:$0xff] %v2655_v36  ;;  %v1356_v24 = vpop.permute.xlu2 %1355  ;;  %v1306_v18 = vpop.permute.xlu1 %1305  ;;  %v598_v36 = vld [vmem:[%s4072_s21 + $0x5d8] sm:$0xff] }
 0x1ee   : > { %v2913_v21 = vadd.f32 %v4959_v40, %v1356_v24  ;;  %v2888_v25 = vadd.f32 %v4756_v51, %v1306_v18  ;;  %v1301_v27 = vpop.permute.xlu0 %1300  ;;  %v597_v24 = vld [vmem:[%s4072_s21 + $0x5d0] sm:$0xff] }
 0x1ef   : > { %v2885_v14 = vadd.f32 %v4734_v34, %v1301_v27 }
 0x1f0   : > { %3223 = vst [vmem:[%s4201_s27 + $0x490] sm:$0xff] %v2913_v21  ;;  %v5048_v47 = vpop.f32.mrf.mxu2 }
 0x1f1   : > { %3213 = vst [vmem:[%s4201_s27 + $0x440] sm:$0xff] %v2888_v25  ;;  %v2792_v40 = vpop.f32.mrf.mxu1  ;;  %v4006_v25 = vld [vmem:[%s4077_s24 + $0x348] sm:$0xff] }
 0x1f2   : > { %3212 = vst [vmem:[%s4201_s27 + $0x438] sm:$0xff] %v2885_v14  ;;  %v2657_v59 = vpop.f32.mrf.mxu0  ;;  %v2793_v34 = vadd.f32 %v2792_v40, %v4723_v20  ;;  %v596_v20 = vld [vmem:[%s4072_s21 + $0x5c8] sm:$0xff] }
 0x1f3   : > { %v2658_v51 = vadd.f32 %v2657_v59, %v5334_v16  ;;  %1535 = vperm.xlu2 %4022, %v593_v9   ;;  %1530 = vperm.xlu1 %4021, %v592_v35   ;;  %v601_v16 = vld [vmem:[%s4072_s21 + $0x5f0] sm:$0xff] }
 0x1f4   : > { %1525 = vperm.xlu0 %4020, %v591_v26   ;;  %3175 = vst [vmem:[%s4201_s27 + $0x310] sm:$0xff] %v2793_v34  ;;  %v5058_v57 = vpop.f32.mrf.mxu3  ;;  %v600_v34 = vld [vmem:[%s4072_s21 + $0x5e8] sm:$0xff] }
 0x1f5   : > { %3121 = vst [vmem:[%s4201_s27 + $0x160] sm:$0xff] %v2658_v51  ;;  %v1371_v32 = vpop.permute.xlu2 %1370  ;;  %v1321_v53 = vpop.permute.xlu1 %1320 }
 0x1f6   : > { %v2920_v31 = vadd.f32 %v2919_v45, %v1371_v32  ;;  %v2895_v6 = vadd.f32 %v4817_v58, %v1321_v53  ;;  %v1316_v41 = vpop.permute.xlu0 %1315  ;;  %v5335_v45 = vld [vmem:[#allocation13_spill] sm:$0xff] }
 0x1f7   : > { %v2893_v11 = vadd.f32 %v4798_v22, %v1316_v41  ;;  %3898 = vmatmul.msk.bf16.gmra.mxu3 %vm2219_vm0, %v4006_v25 }
 0x1f8   : > { %3226 = vst [vmem:[%s4201_s27 + $0x4a8] sm:$0xff] %v2920_v31  ;;  %v2927_v33 = vpop.f32.mrf.mxu2  ;;  %v5337_v31 = vld [vmem:[#allocation4_spill] sm:$0xff] }
 0x1f9   : > { %3216 = vst [vmem:[%s4201_s27 + $0x458] sm:$0xff] %v2895_v6  ;;  %v2794_v55 = vpop.f32.mrf.mxu1  ;;  %v5338_v6 = vld [vmem:[#allocation34_spill] sm:$0xff] }
 0x1fa   : > { %3215 = vst [vmem:[%s4201_s27 + $0x450] sm:$0xff] %v2893_v11  ;;  %v2659_v10 = vpop.f32.mrf.mxu0  ;;  %v2795_v22 = vadd.f32 %v2794_v55, %v4810_v19  ;;  %v599_v19 = vld [vmem:[%s4072_s21 + $0x5e0] sm:$0xff]  ;;  %v604_v55 = vld [vmem:[%s4072_s21 + $0x608] sm:$0xff] }
 0x1fb   : > { %v2660_v58 = vadd.f32 %v2659_v10, %v5335_v45  ;;  %1550 = vperm.xlu2 %4022, %v596_v20   ;;  %1545 = vperm.xlu1 %4021, %v595_v37   ;;  %v605_v10 = vld [vmem:[%s4072_s21 + $0x610] sm:$0xff] }
 0x1fc   : > { %1540 = vperm.xlu0 %4020, %v594_v3   ;;  %3176 = vst [vmem:[%s4201_s27 + $0x318] sm:$0xff] %v2795_v22  ;;  %v5072_v4 = vpop.f32.mrf.mxu3 }
 0x1fd   : > { %3122 = vst [vmem:[%s4201_s27 + $0x168] sm:$0xff] %v2660_v58  ;;  %v1386_v49 = vpop.permute.xlu2 %1385  ;;  %v1336_v17 = vpop.permute.xlu1 %1335  ;;  %v603_v58 = vld [vmem:[%s4072_s21 + $0x600] sm:$0xff] }
 0x1fe   : > { %v2928_v29 = vadd.f32 %v2927_v33, %v1386_v49  ;;  %v2903_v50 = vadd.f32 %v4881_v0, %v1336_v17  ;;  %v1331_v28 = vpop.permute.xlu0 %1330  ;;  %v5336_v0 = vld [vmem:[#allocation12_spill] sm:$0xff] }
 0x1ff   : > { %v2900_v60 = vadd.f32 %v4859_v56, %v1331_v28 }
 0x200   : > { %3229 = vst [vmem:[%s4201_s27 + $0x4c0] sm:$0xff] %v2928_v29  ;;  %v5078_v48 = vpop.f32.mrf.mxu2 }
 0x201   : > { %3219 = vst [vmem:[%s4201_s27 + $0x470] sm:$0xff] %v2903_v50  ;;  %v2797_v21 = vpop.f32.mrf.mxu1 }
 0x202   : > { %3218 = vst [vmem:[%s4201_s27 + $0x468] sm:$0xff] %v2900_v60  ;;  %v2662_v18 = vpop.f32.mrf.mxu0  ;;  %v2798_v56 = vadd.f32 %v2797_v21, %v4806_v63  ;;  %v602_v63 = vld [vmem:[%s4072_s21 + $0x5f8] sm:$0xff] }
 0x203   : > { %v2663_v27 = vadd.f32 %v2662_v18, %v5336_v0  ;;  %1565 = vperm.xlu2 %4022, %v599_v19   ;;  %1560 = vperm.xlu1 %4021, %v598_v36   ;;  %v606_v21 = vld [vmem:[%s4072_s21 + $0x618] sm:$0xff] }
 0x204   : > { %1555 = vperm.xlu0 %4020, %v597_v24   ;;  %3177 = vst [vmem:[%s4201_s27 + $0x320] sm:$0xff] %v2798_v56  ;;  %v5090_v40 = vpop.f32.mrf.mxu3  ;;  %v608_v24 = vld [vmem:[%s4072_s21 + $0x628] sm:$0xff]  ;;  %v5340_v56 = vld [vmem:[#allocation16_spill] sm:$0xff] }
 0x205   : > { %3123 = vst [vmem:[%s4201_s27 + $0x170] sm:$0xff] %v2663_v27  ;;  %v1401_v14 = vpop.permute.xlu2 %1400  ;;  %v1351_v9 = vpop.permute.xlu1 %1350 }
 0x206   : > { %v2910_v35 = vadd.f32 %v4942_v42, %v1351_v9  ;;  %v1346_v26 = vpop.permute.xlu0 %1345 }
 0x207   : > { %v2908_v59 = vadd.f32 %v4923_v1, %v1346_v26 }
 0x208   : > { %3222 = vst [vmem:[%s4201_s27 + $0x488] sm:$0xff] %v2910_v35  ;;  %v2932_v51 = vpop.f32.mrf.mxu2  ;;  %v5341_v35 = vld [vmem:[#allocation21_spill] sm:$0xff] }
 0x209   : > { %3221 = vst [vmem:[%s4201_s27 + $0x480] sm:$0xff] %v2908_v59  ;;  %v2799_v53 = vpop.f32.mrf.mxu1 }
 0x20a   : > { %v2664_v32 = vpop.f32.mrf.mxu0  ;;  %v2800_v41 = vadd.f32 %v2799_v53, %v5338_v6  ;;  %v609_v53 = vld [vmem:[%s4072_s21 + $0x630] sm:$0xff]  ;;  %v5342_v6 = vld [vmem:[#allocation5_spill] sm:$0xff] }
 0x20b   : > { %v2665_v42 = vadd.f32 %v2664_v32, %v5337_v31  ;;  %1580 = vperm.xlu2 %4022, %v602_v63   ;;  %1575 = vperm.xlu1 %4021, %v601_v16   ;;  %v610_v32 = vld [vmem:[%s4072_s21 + $0x638] sm:$0xff] }
 0x20c   : > { %1570 = vperm.xlu0 %4020, %v600_v34   ;;  %3178 = vst [vmem:[%s4201_s27 + $0x328] sm:$0xff] %v2800_v41  ;;  %v5105_v3 = vpop.f32.mrf.mxu3  ;;  %v611_v34 = vld [vmem:[%s4072_s21 + $0x640] sm:$0xff] }
 0x20d   : > { %3124 = vst [vmem:[%s4201_s27 + $0x178] sm:$0xff] %v2665_v42  ;;  %v5100_v1 = vpop.permute.xlu2 %1415  ;;  %v1366_v11 = vpop.permute.xlu1 %1365 }
 0x20e   : > { %v2918_v20 = vadd.f32 %v4995_v62, %v1366_v11  ;;  %v1361_v37 = vpop.permute.xlu0 %1360  ;;  %v5339_v62 = vld [vmem:[#allocation17_spill] sm:$0xff]  ;;  %v5343_v11 = vld [vmem:[#allocation36_spill] sm:$0xff] }
 0x20f   : > { %v2915_v33 = vadd.f32 %v4978_v54, %v1361_v37 }
 0x210   : > { %3225 = vst [vmem:[%s4201_s27 + $0x4a0] sm:$0xff] %v2918_v20  ;;  %v2934_v45 = vpop.f32.mrf.mxu2 }
 0x211   : > { %3224 = vst [vmem:[%s4201_s27 + $0x498] sm:$0xff] %v2915_v33  ;;  %v2935_v22 = vadd.f32 %v2934_v45, %v1401_v14  ;;  %v2802_v17 = vpop.f32.mrf.mxu1  ;;  %v5344_v33 = vld [vmem:[#allocation24_spill] sm:$0xff] }
 0x212   : > { %v2667_v49 = vpop.f32.mrf.mxu0  ;;  %v2803_v54 = vadd.f32 %v2802_v17, %v4832_v13  ;;  %v607_v13 = vld [vmem:[%s4072_s21 + $0x620] sm:$0xff] }
 0x213   : > { %v2668_v29 = vadd.f32 %v2667_v49, %v5339_v62  ;;  %1595 = vperm.xlu2 %4022, %v605_v10   ;;  %1590 = vperm.xlu1 %4021, %v604_v55   ;;  %3232 = vst [vmem:[%s4201_s27 + $0x4d8] sm:$0xff] %v2935_v22  ;;  %v614_v22 = vld [vmem:[%s4072_s21 + $0x658] sm:$0xff]  ;;  %v613_v49 = vld [vmem:[%s4072_s21 + $0x650] sm:$0xff]  ;;  %v612_v62 = vld [vmem:[%s4072_s21 + $0x648] sm:$0xff] }
 0x214   : > { %1585 = vperm.xlu0 %4020, %v603_v58   ;;  %3179 = vst [vmem:[%s4201_s27 + $0x330] sm:$0xff] %v2803_v54  ;;  %v5126_v25 = vpop.f32.mrf.mxu3 }
 0x215   : > { %3125 = vst [vmem:[%s4201_s27 + $0x180] sm:$0xff] %v2668_v29  ;;  %v5116_v50 = vpop.permute.xlu2 %1430  ;;  %v1381_v28 = vpop.permute.xlu1 %1380 }
 0x216   : > { %v2925_v60 = vadd.f32 %v5048_v47, %v1381_v28  ;;  %v1376_v19 = vpop.permute.xlu0 %1375 }
 0x217   : > { %v2923_v36 = vadd.f32 %v5029_v8, %v1376_v19 }
 0x218   : > { %3228 = vst [vmem:[%s4201_s27 + $0x4b8] sm:$0xff] %v2925_v60  ;;  %v2937_v18 = vpop.f32.mrf.mxu2  ;;  %v5345_v60 = vld [vmem:[#allocation20_spill] sm:$0xff] }
 0x219   : > { %3227 = vst [vmem:[%s4201_s27 + $0x4b0] sm:$0xff] %v2923_v36  ;;  %v2804_v27 = vpop.f32.mrf.mxu1 }
 0x21a   : > { %v2669_v0 = vpop.f32.mrf.mxu0  ;;  %v2805_v14 = vadd.f32 %v2804_v27, %v4826_v15  ;;  %v617_v27 = vld [vmem:[%s4072_s21 + $0x670] sm:$0xff] }
 0x21b   : > { %v2670_v47 = vadd.f32 %v2669_v0, %v5340_v56  ;;  %1610 = vperm.xlu2 %4022, %v608_v24   ;;  %1605 = vperm.xlu1 %4021, %v607_v13  }
 0x21c   : > { %1600 = vperm.xlu0 %4020, %v606_v21   ;;  %3180 = vst [vmem:[%s4201_s27 + $0x338] sm:$0xff] %v2805_v14 }
 0x21d   : > { %3126 = vst [vmem:[%s4201_s27 + $0x188] sm:$0xff] %v2670_v47  ;;  %v1446_v8 = vpop.permute.xlu2 %1445  ;;  %v1396_v9 = vpop.permute.xlu1 %1395  ;;  %v615_v47 = vld [vmem:[%s4072_s21 + $0x660] sm:$0xff] }
 0x21e   : > { %v2958_v26 = vadd.f32 %v5341_v35, %v1446_v8  ;;  %v2933_v59 = vadd.f32 %v2932_v51, %v1396_v9  ;;  %v1391_v63 = vpop.permute.xlu0 %1390  ;;  %v5347_v35 = vld [vmem:[#allocation19_spill] sm:$0xff] }
 0x21f   : > { %v2930_v16 = vadd.f32 %v5078_v48, %v1391_v63  ;;  %v5142_v48 = vpop.f32.mrf.mxu3 }
 0x220   : > { %3241 = vst [vmem:[%s4201_s27 + $0x520] sm:$0xff] %v2958_v26  ;;  %v2939_v15 = vpop.f32.mrf.mxu2 }
 0x221   : > { %3231 = vst [vmem:[%s4201_s27 + $0x4d0] sm:$0xff] %v2933_v59  ;;  %v2807_v42 = vpop.f32.mrf.mxu1 }
 0x222   : > { %3230 = vst [vmem:[%s4201_s27 + $0x4c8] sm:$0xff] %v2930_v16  ;;  %v2672_v31 = vpop.f32.mrf.mxu0  ;;  %v2808_v51 = vadd.f32 %v2807_v42, %v5343_v11  ;;  %v5350_v42 = vld [vmem:[#allocation14_spill] sm:$0xff] }
 0x223   : > { %v2673_v41 = vadd.f32 %v2672_v31, %v5342_v6  ;;  %1625 = vperm.xlu2 %4022, %v611_v34   ;;  %1620 = vperm.xlu1 %4021, %v610_v32   ;;  %v5348_v34 = vld [vmem:[#allocation30_spill] sm:$0xff] }
 0x224   : > { %1615 = vperm.xlu0 %4020, %v609_v53   ;;  %3181 = vst [vmem:[%s4201_s27 + $0x340] sm:$0xff] %v2808_v51 }
 0x225   : > { %3127 = vst [vmem:[%s4201_s27 + $0x190] sm:$0xff] %v2673_v41  ;;  %v1461_v20 = vpop.permute.xlu2 %1460  ;;  %v1411_v37 = vpop.permute.xlu1 %1410  ;;  %v619_v41 = vld [vmem:[%s4072_s21 + $0x680] sm:$0xff] }
 0x226   : > { %v2965_v10 = vadd.f32 %v5344_v33, %v1461_v20  ;;  %v2940_v55 = vadd.f32 %v2939_v15, %v1411_v37  ;;  %v1406_v45 = vpop.permute.xlu0 %1405  ;;  %v5349_v15 = vld [vmem:[#allocation18_spill] sm:$0xff]  ;;  %v618_v20 = vld [vmem:[%s4072_s21 + $0x678] sm:$0xff] }
 0x227   : > { %v2938_v58 = vadd.f32 %v2937_v18, %v1406_v45  ;;  %v5346_v18 = vld [vmem:[#allocation27_spill] sm:$0xff]  ;;  %v5160_v0 = vpop.f32.mrf.mxu3 }
 0x228   : > { %3244 = vst [vmem:[%s4201_s27 + $0x538] sm:$0xff] %v2965_v10  ;;  %v2942_v17 = vpop.f32.mrf.mxu2 }
 0x229   : > { %3234 = vst [vmem:[%s4201_s27 + $0x4e8] sm:$0xff] %v2940_v55  ;;  %v2943_v29 = vadd.f32 %v2942_v17, %v5100_v1  ;;  %v2809_v28 = vpop.f32.mrf.mxu1  ;;  %v5351_v55 = vld [vmem:[#allocation8_spill] sm:$0xff] }
 0x22a   : > { %3233 = vst [vmem:[%s4201_s27 + $0x4e0] sm:$0xff] %v2938_v58  ;;  %v2674_v54 = vpop.f32.mrf.mxu0  ;;  %v2810_v36 = vadd.f32 %v2809_v28, %v4852_v39  ;;  %v616_v39 = vld [vmem:[%s4072_s21 + $0x668] sm:$0xff]  ;;  %v5352_v58 = vld [vmem:[#allocation38_spill] sm:$0xff] }
 0x22b   : > { %v2675_v19 = vadd.f32 %v2674_v54, %v5345_v60  ;;  %1640 = vperm.xlu2 %4022, %v614_v22   ;;  %1635 = vperm.xlu1 %4021, %v613_v49   ;;  %3235 = vst [vmem:[%s4201_s27 + $0x4f0] sm:$0xff] %v2943_v29  ;;  %v5354_v54 = vld [vmem:[#allocation23_spill] sm:$0xff] }
 0x22c   : > { %1630 = vperm.xlu0 %4020, %v612_v62   ;;  %3182 = vst [vmem:[%s4201_s27 + $0x348] sm:$0xff] %v2810_v36  ;;  %v5353_v62 = vld [vmem:[#allocation33_spill] sm:$0xff] }
 0x22d   : > { %3128 = vst [vmem:[%s4201_s27 + $0x198] sm:$0xff] %v2675_v19  ;;  %v1476_v24 = vpop.permute.xlu2 %1475  ;;  %v1426_v13 = vpop.permute.xlu1 %1425  ;;  %v5355_v19 = vld [vmem:[#allocation22_spill] sm:$0xff] }
 0x22e   : > { %v2973_v1 = vadd.f32 %v5346_v18, %v1476_v24  ;;  %v1421_v21 = vpop.permute.xlu0 %1420  ;;  %v622_v24 = vld [vmem:[%s4072_s21 + $0x698] sm:$0xff]  ;;  %v621_v18 = vld [vmem:[%s4072_s21 + $0x690] sm:$0xff] }
 0x22f   : > { %v5177_v11 = vpop.f32.mrf.mxu3 }
 0x230   : > { %3247 = vst [vmem:[%s4201_s27 + $0x550] sm:$0xff] %v2973_v1  ;;  %v2944_v56 = vpop.f32.mrf.mxu2 }
 0x231   : > { %v2945_v14 = vadd.f32 %v2944_v56, %v1421_v21  ;;  %v2812_v9 = vpop.f32.mrf.mxu1  ;;  %v5356_v56 = vld [vmem:[#allocation39_spill] sm:$0xff] }
 0x232   : > { %v2677_v8 = vpop.f32.mrf.mxu0  ;;  %v2813_v59 = vadd.f32 %v2812_v9, %v4848_v44  ;;  %v620_v44 = vld [vmem:[%s4072_s21 + $0x688] sm:$0xff] }
 0x233   : > { %v2678_v26 = vadd.f32 %v2677_v8, %v5347_v35  ;;  %1655 = vperm.xlu2 %4022, %v617_v27   ;;  %1650 = vperm.xlu1 %4021, %v616_v39   ;;  %3236 = vst [vmem:[%s4201_s27 + $0x4f8] sm:$0xff] %v2945_v14  ;;  %v5357_v14 = vld [vmem:[#allocation26_spill] sm:$0xff]  ;;  %v5358_v35 = vld [vmem:[#allocation25_spill] sm:$0xff] }
 0x234   : > { %1645 = vperm.xlu0 %4020, %v615_v47   ;;  %3183 = vst [vmem:[%s4201_s27 + $0x350] sm:$0xff] %v2813_v59 }
 0x235   : > { %3129 = vst [vmem:[%s4201_s27 + $0x1a0] sm:$0xff] %v2678_v26  ;;  %v1491_v63 = vpop.permute.xlu2 %1490  ;;  %v1441_v16 = vpop.permute.xlu1 %1440 }
 0x236   : > { %v2980_v32 = vadd.f32 %v5348_v34, %v1491_v63  ;;  %v2955_v53 = vadd.f32 %v5349_v15, %v1441_v16  ;;  %v1436_v31 = vpop.permute.xlu0 %1435  ;;  %v5359_v34 = vld [vmem:[#allocation29_spill] sm:$0xff] }
 0x237   : > { %v2953_v6 = vadd.f32 %v5350_v42, %v1436_v31  ;;  %v5196_v21 = vpop.f32.mrf.mxu3 }
 0x238   : > { %3250 = vst [vmem:[%s4201_s27 + $0x568] sm:$0xff] %v2980_v32  ;;  %v2947_v51 = vpop.f32.mrf.mxu2 }
 0x239   : > { %3240 = vst [vmem:[%s4201_s27 + $0x518] sm:$0xff] %v2955_v53  ;;  %v2948_v37 = vadd.f32 %v2947_v51, %v1426_v13  ;;  %v2814_v10 = vpop.f32.mrf.mxu1  ;;  %v5360_v53 = vld [vmem:[#allocation28_spill] sm:$0xff] }
 0x23a   : > { %3239 = vst [vmem:[%s4201_s27 + $0x510] sm:$0xff] %v2953_v6  ;;  %v2679_v33 = vpop.f32.mrf.mxu0  ;;  %v2815_v22 = vadd.f32 %v2814_v10, %v5352_v58  ;;  %v5363_v58 = vld [vmem:[#allocation37_spill] sm:$0xff] }
 0x23b   : > { %v2680_v45 = vadd.f32 %v2679_v33, %v5351_v55  ;;  %1670 = vperm.xlu2 %4022, %v620_v44   ;;  %1665 = vperm.xlu1 %4021, %v619_v41   ;;  %3237 = vst [vmem:[%s4201_s27 + $0x500] sm:$0xff] %v2948_v37  ;;  %v5361_v41 = vld [vmem:[#allocation32_spill] sm:$0xff]  ;;  %v5362_v37 = vld [vmem:[#allocation31_spill] sm:$0xff] }
 0x23c   : > { %1660 = vperm.xlu0 %4020, %v618_v20   ;;  %3184 = vst [vmem:[%s4201_s27 + $0x358] sm:$0xff] %v2815_v22 }
 0x23d   : > { %3130 = vst [vmem:[%s4201_s27 + $0x1a8] sm:$0xff] %v2680_v45  ;;  %v1506_v49 = vpop.permute.xlu2 %1505  ;;  %v1456_v17 = vpop.permute.xlu1 %1455 }
 0x23e   : > { %v2988_v29 = vadd.f32 %v5353_v62, %v1506_v49  ;;  %v2963_v28 = vadd.f32 %v5354_v54, %v1456_v17  ;;  %v1451_v60 = vpop.permute.xlu0 %1450  ;;  %v5364_v49 = vld [vmem:[#allocation35_spill] sm:$0xff] }
 0x23f   : > { %v2960_v36 = vadd.f32 %v5355_v19, %v1451_v60  ;;  %v5365_v60 = vld [vmem:[#allocation41_spill] sm:$0xff] }
 0x240   : > { %3253 = vst [vmem:[%s4201_s27 + $0x580] sm:$0xff] %v2988_v29  ;;  %v2949_v13 = vpop.f32.mrf.mxu2 }
 0x241   : > { %3243 = vst [vmem:[%s4201_s27 + $0x530] sm:$0xff] %v2963_v28  ;;  %v2950_v1 = vadd.f32 %v2949_v13, %v5116_v50  ;;  %v5205_v50 = vpop.f32.mrf.mxu3 }
 0x242   : > { %3242 = vst [vmem:[%s4201_s27 + $0x528] sm:$0xff] %v2960_v36  ;;  %v5366_v36 = vld [vmem:[#allocation40_spill] sm:$0xff] }
 0x243   : > { %1680 = vperm.xlu1 %4021, %v622_v24   ;;  %3238 = vst [vmem:[%s4201_s27 + $0x508] sm:$0xff] %v2950_v1 }
 0x244   : > { %1675 = vperm.xlu0 %4020, %v621_v18  }
 0x245   : > { %v1521_v27 = vpop.permute.xlu2 %1520  ;;  %v1471_v39 = vpop.permute.xlu1 %1470 }
 0x246   : > { %v2995_v47 = vadd.f32 %v5356_v56, %v1521_v27  ;;  %v2970_v8 = vadd.f32 %v5357_v14, %v1471_v39  ;;  %v1466_v9 = vpop.permute.xlu0 %1465 }
 0x247   : > { %v2968_v26 = vadd.f32 %v5358_v35, %v1466_v9 }
 0x248   : > { %3256 = vst [vmem:[%s4201_s27 + $0x598] sm:$0xff] %v2995_v47 }
 0x249   : > { %3246 = vst [vmem:[%s4201_s27 + $0x548] sm:$0xff] %v2970_v8 }
 0x24a   : > { %3245 = vst [vmem:[%s4201_s27 + $0x540] sm:$0xff] %v2968_v26 }
 0x24d   : > { %v1536_v59 = vpop.permute.xlu2 %1535  ;;  %v1486_v63 = vpop.permute.xlu1 %1485 }
 0x24e   : > { %v3003_v16 = vadd.f32 %v4854_v7, %v1536_v59  ;;  %v2978_v32 = vadd.f32 %v5359_v34, %v1486_v63  ;;  %v1481_v15 = vpop.permute.xlu0 %1480  ;;  %v3054_v7 = vpop.f32.mrf.mxu3 }
 0x24f   : > { %v2975_v31 = vadd.f32 %v5360_v53, %v1481_v15 }
 0x250   : > { %3259 = vst [vmem:[%s4201_s27 + $0x5b0] sm:$0xff] %v3003_v16 }
 0x251   : > { %3249 = vst [vmem:[%s4201_s27 + $0x560] sm:$0xff] %v2978_v32 }
 0x252   : > { %3248 = vst [vmem:[%s4201_s27 + $0x558] sm:$0xff] %v2975_v31 }
 0x255   : > { %v1551_v42 = vpop.permute.xlu2 %1550  ;;  %v1501_v6 = vpop.permute.xlu1 %1500 }
 0x256   : > { %v3010_v44 = vadd.f32 %v4917_v52, %v1551_v42  ;;  %v2985_v51 = vadd.f32 %v5361_v41, %v1501_v6  ;;  %v1496_v20 = vpop.permute.xlu0 %1495  ;;  %v5223_v62 = vpop.f32.mrf.mxu3 }
 0x257   : > { %v2983_v33 = vadd.f32 %v5362_v37, %v1496_v20 }
 0x258   : > { %3262 = vst [vmem:[%s4201_s27 + $0x5c8] sm:$0xff] %v3010_v44 }
 0x259   : > { %3252 = vst [vmem:[%s4201_s27 + $0x578] sm:$0xff] %v2985_v51 }
 0x25a   : > { %3251 = vst [vmem:[%s4201_s27 + $0x570] sm:$0xff] %v2983_v33 }
 0x25d   : > { %v1566_v10 = vpop.permute.xlu2 %1565  ;;  %v1516_v55 = vpop.permute.xlu1 %1515 }
 0x25e   : > { %v3018_v45 = vadd.f32 %v4972_v43, %v1566_v10  ;;  %v2993_v52 = vadd.f32 %v5363_v58, %v1516_v55  ;;  %v1511_v22 = vpop.permute.xlu0 %1510  ;;  %v5233_v13 = vpop.f32.mrf.mxu3 }
 0x25f   : > { %v2990_v17 = vadd.f32 %v5364_v49, %v1511_v22 }
 0x260   : > { %3265 = vst [vmem:[%s4201_s27 + $0x5e0] sm:$0xff] %v3018_v45 }
 0x261   : > { %3255 = vst [vmem:[%s4201_s27 + $0x590] sm:$0xff] %v2993_v52 }
 0x262   : > { %3254 = vst [vmem:[%s4201_s27 + $0x588] sm:$0xff] %v2990_v17 }
 0x265   : > { %v1581_v29 = vpop.permute.xlu2 %1580  ;;  %v1531_v54 = vpop.permute.xlu1 %1530 }
 0x266   : > { %v3025_v28 = vadd.f32 %v5023_v5, %v1581_v29  ;;  %v3000_v43 = vadd.f32 %v5365_v60, %v1531_v54  ;;  %v1526_v19 = vpop.permute.xlu0 %1525  ;;  %v3062_v47 = vpop.f32.mrf.mxu3 }
 0x267   : > { %v2998_v24 = vadd.f32 %v5366_v36, %v1526_v19 }
 0x268   : > { %3268 = vst [vmem:[%s4201_s27 + $0x5f8] sm:$0xff] %v3025_v28 }
 0x269   : > { %3258 = vst [vmem:[%s4201_s27 + $0x5a8] sm:$0xff] %v3000_v43 }
 0x26a   : > { %3257 = vst [vmem:[%s4201_s27 + $0x5a0] sm:$0xff] %v2998_v24 }
 0x26d   : > { %v1596_v18 = vpop.permute.xlu2 %1595  ;;  %v1546_v1 = vpop.permute.xlu1 %1545 }
 0x26e   : > { %v3033_v27 = vadd.f32 %v5072_v4, %v1596_v18  ;;  %v3008_v5 = vadd.f32 %v4894_v2, %v1546_v1  ;;  %v1541_v39 = vpop.permute.xlu0 %1540  ;;  %v3064_v34 = vpop.f32.mrf.mxu3 }
 0x26f   : > { %v3005_v56 = vadd.f32 %v4875_v30, %v1541_v39 }
 0x270   : > { %3271 = vst [vmem:[%s4201_s27 + $0x610] sm:$0xff] %v3033_v27 }
 0x271   : > { %3261 = vst [vmem:[%s4201_s27 + $0x5c0] sm:$0xff] %v3008_v5 }
 0x272   : > { %3260 = vst [vmem:[%s4201_s27 + $0x5b8] sm:$0xff] %v3005_v56 }
 0x275   : > { %v1611_v14 = vpop.permute.xlu2 %1610  ;;  %v1561_v8 = vpop.permute.xlu1 %1560 }
 0x276   : > { %v3040_v9 = vadd.f32 %v5126_v25, %v1611_v14  ;;  %v3015_v35 = vadd.f32 %v4953_v38, %v1561_v8  ;;  %v1556_v4 = vpop.permute.xlu0 %1555 }
 0x277   : > { %v3013_v26 = vadd.f32 %v4936_v23, %v1556_v4 }
 0x278   : > { %3274 = vst [vmem:[%s4201_s27 + $0x628] sm:$0xff] %v3040_v9 }
 0x279   : > { %3264 = vst [vmem:[%s4201_s27 + $0x5d8] sm:$0xff] %v3015_v35 }
 0x27a   : > { %3263 = vst [vmem:[%s4201_s27 + $0x5d0] sm:$0xff] %v3013_v26 }
 0x27d   : > { %v1626_v30 = vpop.permute.xlu2 %1625  ;;  %v1576_v2 = vpop.permute.xlu1 %1575 }
 0x27e   : > { %v3048_v59 = vadd.f32 %v5177_v11, %v1626_v30  ;;  %v3023_v63 = vadd.f32 %v5008_v12, %v1576_v2  ;;  %v1571_v16 = vpop.permute.xlu0 %1570  ;;  %v3067_v12 = vpop.f32.mrf.mxu3 }
 0x27f   : > { %v3020_v25 = vadd.f32 %v4989_v61, %v1571_v16 }
 0x280   : > { %3277 = vst [vmem:[%s4201_s27 + $0x640] sm:$0xff] %v3048_v59 }
 0x281   : > { %3267 = vst [vmem:[%s4201_s27 + $0x5f0] sm:$0xff] %v3023_v63 }
 0x282   : > { %3266 = vst [vmem:[%s4201_s27 + $0x5e8] sm:$0xff] %v3020_v25 }
 0x285   : > { %v1641_v23 = vpop.permute.xlu2 %1640  ;;  %v1591_v38 = vpop.permute.xlu1 %1590 }
 0x286   : > { %v3055_v32 = vadd.f32 %v3054_v7, %v1641_v23  ;;  %v3030_v15 = vadd.f32 %v5058_v57, %v1591_v38  ;;  %v1586_v53 = vpop.permute.xlu0 %1585 }
 0x287   : > { %v3028_v11 = vadd.f32 %v5042_v46, %v1586_v53  ;;  %v3069_v46 = vpop.f32.mrf.mxu3 }
 0x288   : > { %3280 = vst [vmem:[%s4201_s27 + $0x658] sm:$0xff] %v3055_v32 }
 0x289   : > { %3270 = vst [vmem:[%s4201_s27 + $0x608] sm:$0xff] %v3030_v15 }
 0x28a   : > { %3269 = vst [vmem:[%s4201_s27 + $0x600] sm:$0xff] %v3028_v11 }
 0x28d   : > { %v1656_v61 = vpop.permute.xlu2 %1655  ;;  %v1606_v31 = vpop.permute.xlu1 %1605 }
 0x28e   : > { %v3063_v42 = vadd.f32 %v3062_v47, %v1656_v61  ;;  %v3038_v6 = vadd.f32 %v5105_v3, %v1606_v31  ;;  %v1601_v44 = vpop.permute.xlu0 %1600 }
 0x28f   : > { %v3035_v41 = vadd.f32 %v5090_v40, %v1601_v44  ;;  %v3072_v52 = vpop.f32.mrf.mxu3 }
 0x290   : > { %3283 = vst [vmem:[%s4201_s27 + $0x670] sm:$0xff] %v3063_v42 }
 0x291   : > { %3273 = vst [vmem:[%s4201_s27 + $0x620] sm:$0xff] %v3038_v6 }
 0x292   : > { %3272 = vst [vmem:[%s4201_s27 + $0x618] sm:$0xff] %v3035_v41 }
 0x295   : > { %v1671_v57 = vpop.permute.xlu2 %1670  ;;  %v1621_v51 = vpop.permute.xlu1 %1620 }
 0x296   : > { %v3045_v20 = vadd.f32 %v5160_v0, %v1621_v51  ;;  %v1616_v7 = vpop.permute.xlu0 %1615  ;;  %v3070_v37 = vadd.f32 %v3069_v46, %v1671_v57 }
 0x297   : > { %v3043_v33 = vadd.f32 %v5142_v48, %v1616_v7 }
 0x298   : > { %3276 = vst [vmem:[%s4201_s27 + $0x638] sm:$0xff] %v3045_v20 }
 0x299   : > { %3275 = vst [vmem:[%s4201_s27 + $0x630] sm:$0xff] %v3043_v33 }
 0x29a   : > { %3286 = vst [vmem:[%s4201_s27 + $0x688] sm:$0xff] %v3070_v37 }
 0x29d   : > { %v1636_v40 = vpop.permute.xlu1 %1635 }
 0x29e   : > { %v3053_v3 = vadd.f32 %v5205_v50, %v1636_v40  ;;  %v1631_v10 = vpop.permute.xlu0 %1630 }
 0x29f   : > { %v3050_v55 = vadd.f32 %v5196_v21, %v1631_v10  ;;  %v3074_v21 = vpop.f32.mrf.mxu3 }
 0x2a0   : > { %3279 = vst [vmem:[%s4201_s27 + $0x650] sm:$0xff] %v3053_v3 }
 0x2a1   : > { %3278 = vst [vmem:[%s4201_s27 + $0x648] sm:$0xff] %v3050_v55 }
 0x2a5   : > { %v1651_v0 = vpop.permute.xlu1 %1650 }
 0x2a6   : > { %v3060_v45 = vadd.f32 %v5233_v13, %v1651_v0  ;;  %v1646_v58 = vpop.permute.xlu0 %1645 }
 0x2a7   : > { %v3058_v48 = vadd.f32 %v5223_v62, %v1646_v58 }
 0x2a8   : > { %3282 = vst [vmem:[%s4201_s27 + $0x668] sm:$0xff] %v3060_v45 }
 0x2a9   : > { %3281 = vst [vmem:[%s4201_s27 + $0x660] sm:$0xff] %v3058_v48 }
 0x2ad   : > { %v1666_v22 = vpop.permute.xlu1 %1665 }
 0x2ae   : > { %v3068_v50 = vadd.f32 %v3067_v12, %v1666_v22  ;;  %v1661_v49 = vpop.permute.xlu0 %1660 }
 0x2af   : > { %v3065_v17 = vadd.f32 %v3064_v34, %v1661_v49 }
 0x2b0   : > { %3285 = vst [vmem:[%s4201_s27 + $0x680] sm:$0xff] %v3068_v50 }
 0x2b1   : > { %3284 = vst [vmem:[%s4201_s27 + $0x678] sm:$0xff] %v3065_v17 }
 0x2b5   : > { %v1681_v29 = vpop.permute.xlu1 %1680 }
 0x2b6   : > { %v3075_v54 = vadd.f32 %v3074_v21, %v1681_v29  ;;  %v1676_v28 = vpop.permute.xlu0 %1675 }
 0x2b7   : > { %v3073_v60 = vadd.f32 %v3072_v52, %v1676_v28 }
 0x2b8   : > { %3288 = vst [vmem:[%s4201_s27 + $0x698] sm:$0xff] %v3075_v54 }
 0x2b9   : > { %3287 = vst [vmem:[%s4201_s27 + $0x690] sm:$0xff] %v3073_v60 }
 0x2ba PF: > { %s13_s12 = sadd.s32 1, %s4029_s12  }
 0x2bb   : > { %p10_p4 = scmp.ge.s32.totalorder %s13_s12, 4  }
 0x2bd   :  { %12 = sbr.rel (!%p10_p4) target bundleno = 1 (0x1), region = 65 }

</bundles_post_ra>
